<compile_context>
chip_gen: v6e
topology: v6e:2x2x1
jax: 0.10.0
libtpu: 0.0.40
codegen_flags: <defaults>
</compile_context>

<pallas_src>
import jax
import jax.numpy as jnp
from jax import lax
from jax.experimental import pallas as pl
from jax.experimental.pallas import tpu as pltpu

LANE = 128


def _round_up(x, m):
    return (x + m - 1) // m * m


def bottleneck_kernel(x_ref, w1_ref, b1_ref, w2_ref, b2_ref, w3_ref, b3_ref,
                      out_ref):
    """One batch element per grid step; all convs are MXU matmuls."""
    _, H, W, Cp = x_ref.shape
    Pp = w1_ref.shape[1]
    HW = H * W

    x = x_ref[0].reshape(HW, Cp)                       # f32 (identity path)
    xb = x.astype(jnp.bfloat16)

    # ---- conv1 (1x1, BN1 scale folded into w1) + bias + relu ----
    y1 = jnp.dot(xb, w1_ref[...], preferred_element_type=jnp.float32)
    y1 = jnp.maximum(y1 + b1_ref[...], 0.0)            # (HW, Pp) f32

    # ---- conv2 (3x3, pad=1) as ONE im2col matmul with K = 9*Pp ----
    # H padding: zero row-blocks concatenated at 8-aligned sublane offsets.
    zrow = jnp.zeros((W, Pp), jnp.float32)
    ph = jnp.concatenate([zrow, y1, zrow], axis=0)     # ((H+2)*W, Pp)
    R = (H + 2) * W
    # W shifts via sublane rotation (XLU) + border mask: no misaligned slices.
    # pltpu.roll only accepts non-negative shifts; roll by R-1 == roll by -1.
    left_flat = pltpu.roll(ph, shift=1, axis=0)        # value[r] = ph[r-1]
    right_flat = pltpu.roll(ph, shift=R - 1, axis=0)   # value[r] = ph[r+1]
    shape3 = (H + 2, W, Pp)
    xw = lax.broadcasted_iota(jnp.int32, shape3, 1)    # W coordinate
    center = ph.reshape(shape3)
    left = jnp.where(xw == 0, 0.0, left_flat.reshape(shape3))        # x-1 tap
    right = jnp.where(xw == W - 1, 0.0, right_flat.reshape(shape3))  # x+1 tap
    shifted = (left, center, right)                    # indexed by dx in 0..2
    slab = jnp.concatenate(
        [shifted[dx][dy:dy + H].reshape(HW, Pp)
         for dy in range(3) for dx in range(3)], axis=1)   # (HW, 9*Pp)
    y2 = jnp.dot(slab.astype(jnp.bfloat16), w2_ref[...],
                 preferred_element_type=jnp.float32)
    y2 = jnp.maximum(y2 + b2_ref[...], 0.0)            # (HW, Pp)

    # ---- conv3 (1x1, x4 expansion) + bias + residual + relu ----
    y3 = jnp.dot(y2.astype(jnp.bfloat16), w3_ref[...],
                 preferred_element_type=jnp.float32)
    y3 = y3 + b3_ref[...] + x                          # residual add in f32
    out_ref[0] = jnp.maximum(y3, 0.0).reshape(H, W, Cp)


def prepare_params(raw, eps=1e-5):
    """Fold BN scales into conv weights, zero-pad channels to LANE multiples,
    cast weights to bf16 (biases stay f32). Done once, outside the kernel."""
    w1, w2, w3 = raw["w1"], raw["w2"], raw["w3"]
    Cin, P = w1.shape
    Cout = w3.shape[1]

    def fold(gamma, beta, mean, var):
        scale = gamma / jnp.sqrt(var + eps)
        return scale, beta - mean * scale

    s1, b1 = fold(*raw["bn1"])
    s2, b2 = fold(*raw["bn2"])
    s3, b3 = fold(*raw["bn3"])

    Cp = _round_up(Cin, LANE)
    Pp = _round_up(P, LANE)
    Coutp = _round_up(Cout, LANE)

    w1p = jnp.zeros((Cp, Pp), jnp.float32).at[:Cin, :P].set(w1 * s1[None, :])
    w2p = jnp.zeros((3, 3, Pp, Pp), jnp.float32).at[:, :, :P, :P].set(
        w2 * s2[None, None, None, :]).reshape(9 * Pp, Pp)
    w3p = jnp.zeros((Pp, Coutp), jnp.float32).at[:P, :Cout].set(
        w3 * s3[None, :])
    b1p = jnp.zeros((1, Pp), jnp.float32).at[:, :P].set(b1[None, :])
    b2p = jnp.zeros((1, Pp), jnp.float32).at[:, :P].set(b2[None, :])
    b3p = jnp.zeros((1, Coutp), jnp.float32).at[:, :Cout].set(b3[None, :])
    return (w1p.astype(jnp.bfloat16), b1p,
            w2p.astype(jnp.bfloat16), b2p,
            w3p.astype(jnp.bfloat16), b3p)


def bottleneck_forward(x_nchw, prepared):
    """x_nchw: (N, C, H, W) float32. Returns (N, C, H, W)."""
    # TODO(synk): keep activations NHWC across consecutive blocks so the
    # NCHW<->NHWC transposes (full HBM round trips) are paid once per network,
    # not per block.
    w1p, b1p, w2p, b2p, w3p, b3p = prepared
    Cp, Pp = w1p.shape
    Coutp = w3p.shape[1]
    assert Cp == Coutp, "residual add requires inplanes == planes * expansion"

    x = jnp.transpose(x_nchw, (0, 2, 3, 1)).astype(jnp.float32)   # NHWC
    N, H, W, Cin = x.shape
    assert W % 8 == 0, "W must be a multiple of 8 (sublane tile)"
    if Cp != Cin:
        x = jnp.pad(x, ((0, 0), (0, 0), (0, 0), (0, Cp - Cin)))

    def full_spec(a):
        zeros = (0,) * a.ndim
        return pl.BlockSpec(a.shape, lambda n, _z=zeros: _z)

    out = pl.pallas_call(
        bottleneck_kernel,
        out_shape=jax.ShapeDtypeStruct((N, H, W, Cp), jnp.float32),
        grid=(N,),
        in_specs=[
            pl.BlockSpec((1, H, W, Cp), lambda n: (n, 0, 0, 0)),
            full_spec(w1p), full_spec(b1p),
            full_spec(w2p), full_spec(b2p),
            full_spec(w3p), full_spec(b3p),
        ],
        out_specs=pl.BlockSpec((1, H, W, Cp), lambda n: (n, 0, 0, 0)),
        compiler_params=pltpu.CompilerParams(
            dimension_semantics=("parallel",),
            vmem_limit_bytes=48 * 1024 * 1024),
    )(x, w1p, b1p, w2p, b2p, w3p, b3p)

    out = out[..., :Cin]                       # drop channel padding
    return jnp.transpose(out, (0, 3, 1, 2))    # back to NCHW


def init_params(key, inplanes, planes):
    """Deterministic synthetic parameters (shapes match Bottleneck.__init__)."""
    exp = 4
    keys = jax.random.split(key, 15)
    w1 = 0.1 * jax.random.normal(keys[0], (inplanes, planes), jnp.float32)
    w2 = 0.1 * jax.random.normal(keys[1], (3, 3, planes, planes), jnp.float32)
    w3 = 0.1 * jax.random.normal(keys[2], (planes, planes * exp), jnp.float32)

    def bn(kg, kb, km, kv, c):
        gamma = 1.0 + 0.1 * jax.random.normal(kg, (c,), jnp.float32)
        beta = 0.1 * jax.random.normal(kb, (c,), jnp.float32)
        mean = 0.1 * jax.random.normal(km, (c,), jnp.float32)
        var = jax.random.uniform(kv, (c,), jnp.float32, minval=0.5, maxval=1.5)
        return gamma, beta, mean, var

    return dict(w1=w1, w2=w2, w3=w3,
                bn1=bn(keys[3], keys[4], keys[5], keys[6], planes),
                bn2=bn(keys[7], keys[8], keys[9], keys[10], planes),
                bn3=bn(keys[11], keys[12], keys[13], keys[14], planes * exp))


def reference_forward(x_nchw, raw, eps=1e-5):
    """Pure-JAX f32 reference of the same block (unfused, unpadded)."""
    x = jnp.transpose(x_nchw, (0, 2, 3, 1))
    dn = ("NHWC", "HWIO", "NHWC")

    def bn(y, gamma, beta, mean, var):
        scale = gamma / jnp.sqrt(var + eps)
        return y * scale + (beta - mean * scale)

    w1, w2, w3 = raw["w1"], raw["w2"], raw["w3"]
    y = lax.conv_general_dilated(x, w1.reshape(1, 1, *w1.shape), (1, 1),
                                 "VALID", dimension_numbers=dn)
    y = jnp.maximum(bn(y, *raw["bn1"]), 0.0)
    y = lax.conv_general_dilated(y, w2, (1, 1), ((1, 1), (1, 1)),
                                 dimension_numbers=dn)
    y = jnp.maximum(bn(y, *raw["bn2"]), 0.0)
    y = lax.conv_general_dilated(y, w3.reshape(1, 1, *w3.shape), (1, 1),
                                 "VALID", dimension_numbers=dn)
    y = bn(y, *raw["bn3"]) + x
    return jnp.transpose(jnp.maximum(y, 0.0), (0, 3, 1, 2))


if __name__ == "__main__":
    # Small Bottleneck-consistent shapes: inplanes = planes * expansion.
    N, planes, H, W = 2, 4, 16, 16
    inplanes = planes * 4   # 16

    key = jax.random.PRNGKey(0)
    kx, kp = jax.random.split(key)
    x = jax.random.normal(kx, (N, inplanes, H, W), jnp.float32)   # NCHW input
    raw = init_params(kp, inplanes, planes)
    prepared = prepare_params(raw)

    out = jax.block_until_ready(bottleneck_forward(x, prepared))
    ref = reference_forward(x, raw)

    assert out.shape == (N, inplanes, H, W)
    # bf16 MXU inputs with f32 accumulation -> modest tolerance vs f32 ref.
    assert jnp.allclose(out, ref, atol=2e-2, rtol=2e-2), "mismatch vs reference"
    print("KERNEL_OK")
</pallas_src>

<mosaic_0001>
module attributes {stable_mosaic.version = 11 : i64} {
  func.func @bottleneck_kernel(%arg0: i32, %arg1: memref<1x16x16x128xf32, #tpu.memory_space<vmem>>, %arg2: memref<128x128xbf16, #tpu.memory_space<vmem>>, %arg3: memref<1x128xf32, #tpu.memory_space<vmem>>, %arg4: memref<1152x128xbf16, #tpu.memory_space<vmem>>, %arg5: memref<1x128xf32, #tpu.memory_space<vmem>>, %arg6: memref<128x128xbf16, #tpu.memory_space<vmem>>, %arg7: memref<1x128xf32, #tpu.memory_space<vmem>>, %arg8: memref<1x16x16x128xf32, #tpu.memory_space<vmem>>) attributes {dimension_semantics = [#tpu.dimension_semantics<parallel>], iteration_bounds = array<i64: 2>, scalar_prefetch = 0 : i64, scratch_operands = 0 : i64, tpu.core_type = #tpu.core_type<tc>, window_params = [{transform_indices = @transform_0, window_bounds = array<i64: 1, 16, 16, 128>}, {pipeline_mode = #tpu.pipeline_mode<synchronous>, transform_indices = @transform_1, window_bounds = array<i64: 128, 128>}, {pipeline_mode = #tpu.pipeline_mode<synchronous>, transform_indices = @transform_2, window_bounds = array<i64: 1, 128>}, {pipeline_mode = #tpu.pipeline_mode<synchronous>, transform_indices = @transform_3, window_bounds = array<i64: 1152, 128>}, {pipeline_mode = #tpu.pipeline_mode<synchronous>, transform_indices = @transform_4, window_bounds = array<i64: 1, 128>}, {pipeline_mode = #tpu.pipeline_mode<synchronous>, transform_indices = @transform_5, window_bounds = array<i64: 128, 128>}, {pipeline_mode = #tpu.pipeline_mode<synchronous>, transform_indices = @transform_6, window_bounds = array<i64: 1, 128>}, {transform_indices = @transform_7, window_bounds = array<i64: 1, 16, 16, 128>}]} {
    %c0 = arith.constant 0 : index
    %c0_0 = arith.constant 0 : index
    %c0_1 = arith.constant 0 : index
    %c0_2 = arith.constant 0 : index
    %0 = vector.load %arg1[%c0, %c0_0, %c0_1, %c0_2] : memref<1x16x16x128xf32, #tpu.memory_space<vmem>>, vector<1x16x16x128xf32>
    %1 = vector.shape_cast %0 : vector<1x16x16x128xf32> to vector<16x16x128xf32>
    %2 = vector.shape_cast %1 : vector<16x16x128xf32> to vector<256x128xf32>
    %3 = arith.truncf %2 : vector<256x128xf32> to vector<256x128xbf16>
    %c0_3 = arith.constant 0 : index
    %c0_4 = arith.constant 0 : index
    %4 = vector.load %arg2[%c0_3, %c0_4] : memref<128x128xbf16, #tpu.memory_space<vmem>>, vector<128x128xbf16>
    %cst = arith.constant dense<0.000000e+00> : vector<256x128xf32>
    %5 = tpu.matmul %3, %4, %cst {dimension_numbers = #tpu.dot_dimension_numbers<[1], [0], [0], [1], [0, 0, 1, 1], [], []>} : vector<256x128xbf16>, vector<128x128xbf16>, vector<256x128xf32> -> vector<256x128xf32>
    %c0_5 = arith.constant 0 : index
    %c0_6 = arith.constant 0 : index
    %6 = vector.load %arg3[%c0_5, %c0_6] : memref<1x128xf32, #tpu.memory_space<vmem>>, vector<1x128xf32>
    %7 = vector.broadcast %6 : vector<1x128xf32> to vector<256x128xf32>
    %8 = arith.addf %5, %7 : vector<256x128xf32>
    %cst_7 = arith.constant 0.000000e+00 : f32
    %9 = vector.broadcast %cst_7 : f32 to vector<256x128xf32>
    %10 = arith.maximumf %8, %9 : vector<256x128xf32>
    %cst_8 = arith.constant 0.000000e+00 : f32
    %11 = vector.broadcast %cst_8 : f32 to vector<16x128xf32>
    %12 = tpu.concatenate %11, %10, %11 in 0 : vector<16x128xf32>, vector<256x128xf32>, vector<16x128xf32> -> vector<288x128xf32>
    %c1_i32 = arith.constant 1 : i32
    %13 = tpu.dynamic_rotate %12 by %c1_i32 dim 0 : vector<288x128xf32>, i32 -> vector<288x128xf32>
    %c287_i32 = arith.constant 287 : i32
    %14 = tpu.dynamic_rotate %12 by %c287_i32 dim 0 : vector<288x128xf32>, i32 -> vector<288x128xf32>
    %15 = tpu.iota {dimensions = array<i32: 1>} : vector<18x16x128xi32>
    %16 = vector.shape_cast %12 : vector<288x128xf32> to vector<18x16x128xf32>
    %c0_i32 = arith.constant 0 : i32
    %17 = vector.broadcast %c0_i32 : i32 to vector<18x16x128xi32>
    %18 = arith.cmpi eq, %15, %17 : vector<18x16x128xi32>
    %19 = vector.shape_cast %13 : vector<288x128xf32> to vector<18x16x128xf32>
    %cst_9 = arith.constant 0.000000e+00 : f32
    %20 = vector.broadcast %cst_9 : f32 to vector<18x16x128xf32>
    %21 = arith.select %18, %20, %19 : vector<18x16x128xi1>, vector<18x16x128xf32>
    %c15_i32 = arith.constant 15 : i32
    %22 = vector.broadcast %c15_i32 : i32 to vector<18x16x128xi32>
    %23 = arith.cmpi eq, %15, %22 : vector<18x16x128xi32>
    %24 = vector.shape_cast %14 : vector<288x128xf32> to vector<18x16x128xf32>
    %cst_10 = arith.constant 0.000000e+00 : f32
    %25 = vector.broadcast %cst_10 : f32 to vector<18x16x128xf32>
    %26 = arith.select %23, %25, %24 : vector<18x16x128xi1>, vector<18x16x128xf32>
    %27 = vector.extract_strided_slice %21 {offsets = [0, 0, 0], sizes = [16, 16, 128], strides = [1, 1, 1]} : vector<18x16x128xf32> to vector<16x16x128xf32>
    %28 = vector.shape_cast %27 : vector<16x16x128xf32> to vector<256x128xf32>
    %29 = vector.extract_strided_slice %16 {offsets = [0, 0, 0], sizes = [16, 16, 128], strides = [1, 1, 1]} : vector<18x16x128xf32> to vector<16x16x128xf32>
    %30 = vector.shape_cast %29 : vector<16x16x128xf32> to vector<256x128xf32>
    %31 = vector.extract_strided_slice %26 {offsets = [0, 0, 0], sizes = [16, 16, 128], strides = [1, 1, 1]} : vector<18x16x128xf32> to vector<16x16x128xf32>
    %32 = vector.shape_cast %31 : vector<16x16x128xf32> to vector<256x128xf32>
    %33 = vector.extract_strided_slice %21 {offsets = [1, 0, 0], sizes = [16, 16, 128], strides = [1, 1, 1]} : vector<18x16x128xf32> to vector<16x16x128xf32>
    %34 = vector.shape_cast %33 : vector<16x16x128xf32> to vector<256x128xf32>
    %35 = vector.extract_strided_slice %16 {offsets = [1, 0, 0], sizes = [16, 16, 128], strides = [1, 1, 1]} : vector<18x16x128xf32> to vector<16x16x128xf32>
    %36 = vector.shape_cast %35 : vector<16x16x128xf32> to vector<256x128xf32>
    %37 = vector.extract_strided_slice %26 {offsets = [1, 0, 0], sizes = [16, 16, 128], strides = [1, 1, 1]} : vector<18x16x128xf32> to vector<16x16x128xf32>
    %38 = vector.shape_cast %37 : vector<16x16x128xf32> to vector<256x128xf32>
    %39 = vector.extract_strided_slice %21 {offsets = [2, 0, 0], sizes = [16, 16, 128], strides = [1, 1, 1]} : vector<18x16x128xf32> to vector<16x16x128xf32>
    %40 = vector.shape_cast %39 : vector<16x16x128xf32> to vector<256x128xf32>
    %41 = vector.extract_strided_slice %16 {offsets = [2, 0, 0], sizes = [16, 16, 128], strides = [1, 1, 1]} : vector<18x16x128xf32> to vector<16x16x128xf32>
    %42 = vector.shape_cast %41 : vector<16x16x128xf32> to vector<256x128xf32>
    %43 = vector.extract_strided_slice %26 {offsets = [2, 0, 0], sizes = [16, 16, 128], strides = [1, 1, 1]} : vector<18x16x128xf32> to vector<16x16x128xf32>
    %44 = vector.shape_cast %43 : vector<16x16x128xf32> to vector<256x128xf32>
    %45 = tpu.concatenate %28, %30, %32, %34, %36, %38, %40, %42, %44 in 1 : vector<256x128xf32>, vector<256x128xf32>, vector<256x128xf32>, vector<256x128xf32>, vector<256x128xf32>, vector<256x128xf32>, vector<256x128xf32>, vector<256x128xf32>, vector<256x128xf32> -> vector<256x1152xf32>
    %46 = arith.truncf %45 : vector<256x1152xf32> to vector<256x1152xbf16>
    %c0_11 = arith.constant 0 : index
    %c0_12 = arith.constant 0 : index
    %47 = vector.load %arg4[%c0_11, %c0_12] : memref<1152x128xbf16, #tpu.memory_space<vmem>>, vector<1152x128xbf16>
    %cst_13 = arith.constant dense<0.000000e+00> : vector<256x128xf32>
    %48 = tpu.matmul %46, %47, %cst_13 {dimension_numbers = #tpu.dot_dimension_numbers<[1], [0], [0], [1], [0, 0, 1, 1], [], []>} : vector<256x1152xbf16>, vector<1152x128xbf16>, vector<256x128xf32> -> vector<256x128xf32>
    %c0_14 = arith.constant 0 : index
    %c0_15 = arith.constant 0 : index
    %49 = vector.load %arg5[%c0_14, %c0_15] : memref<1x128xf32, #tpu.memory_space<vmem>>, vector<1x128xf32>
    %50 = vector.broadcast %49 : vector<1x128xf32> to vector<256x128xf32>
    %51 = arith.addf %48, %50 : vector<256x128xf32>
    %cst_16 = arith.constant 0.000000e+00 : f32
    %52 = vector.broadcast %cst_16 : f32 to vector<256x128xf32>
    %53 = arith.maximumf %51, %52 : vector<256x128xf32>
    %54 = arith.truncf %53 : vector<256x128xf32> to vector<256x128xbf16>
    %c0_17 = arith.constant 0 : index
    %c0_18 = arith.constant 0 : index
    %55 = vector.load %arg6[%c0_17, %c0_18] : memref<128x128xbf16, #tpu.memory_space<vmem>>, vector<128x128xbf16>
    %cst_19 = arith.constant dense<0.000000e+00> : vector<256x128xf32>
    %56 = tpu.matmul %54, %55, %cst_19 {dimension_numbers = #tpu.dot_dimension_numbers<[1], [0], [0], [1], [0, 0, 1, 1], [], []>} : vector<256x128xbf16>, vector<128x128xbf16>, vector<256x128xf32> -> vector<256x128xf32>
    %c0_20 = arith.constant 0 : index
    %c0_21 = arith.constant 0 : index
    %57 = vector.load %arg7[%c0_20, %c0_21] : memref<1x128xf32, #tpu.memory_space<vmem>>, vector<1x128xf32>
    %58 = vector.broadcast %57 : vector<1x128xf32> to vector<256x128xf32>
    %59 = arith.addf %56, %58 : vector<256x128xf32>
    %60 = arith.addf %59, %2 : vector<256x128xf32>
    %cst_22 = arith.constant 0.000000e+00 : f32
    %61 = vector.broadcast %cst_22 : f32 to vector<256x128xf32>
    %62 = arith.maximumf %60, %61 : vector<256x128xf32>
    %63 = vector.shape_cast %62 : vector<256x128xf32> to vector<16x16x128xf32>
    %c0_23 = arith.constant 0 : index
    %c0_24 = arith.constant 0 : index
    %c0_25 = arith.constant 0 : index
    %c0_26 = arith.constant 0 : index
    %64 = vector.load %arg8[%c0_23, %c0_24, %c0_25, %c0_26] : memref<1x16x16x128xf32, #tpu.memory_space<vmem>>, vector<1x16x16x128xf32>
    %65 = vector.shape_cast %64 : vector<1x16x16x128xf32> to vector<16x16x128xf32>
    %66 = vector.shape_cast %63 : vector<16x16x128xf32> to vector<1x16x16x128xf32>
    tpu.vector_store %arg8[%c0_23, %c0_24, %c0_25, %c0_26], %66 {strides = array<i32>} : memref<1x16x16x128xf32, #tpu.memory_space<vmem>>, vector<1x16x16x128xf32>,
    return
  }
  func.func @transform_0(%arg0: i32) -> (i32, i32, i32, i32) {
    %c0_i32 = arith.constant 0 : i32
    %c0_i32_0 = arith.constant 0 : i32
    %c0_i32_1 = arith.constant 0 : i32
    %c0_i32_2 = arith.constant 0 : i32
    return %arg0, %c0_i32, %c0_i32_0, %c0_i32_1 : i32, i32, i32, i32
  }
  func.func @transform_1(%arg0: i32) -> (i32, i32) {
    %c0_i32 = arith.constant 0 : i32
    %c0_i32_0 = arith.constant 0 : i32
    %c0_i32_1 = arith.constant 0 : i32
    return %c0_i32, %c0_i32_0 : i32, i32
  }
  func.func @transform_2(%arg0: i32) -> (i32, i32) {
    %c0_i32 = arith.constant 0 : i32
    %c0_i32_0 = arith.constant 0 : i32
    %c0_i32_1 = arith.constant 0 : i32
    return %c0_i32, %c0_i32_0 : i32, i32
  }
  func.func @transform_3(%arg0: i32) -> (i32, i32) {
    %c0_i32 = arith.constant 0 : i32
    %c0_i32_0 = arith.constant 0 : i32
    %c0_i32_1 = arith.constant 0 : i32
    return %c0_i32, %c0_i32_0 : i32, i32
  }
  func.func @transform_4(%arg0: i32) -> (i32, i32) {
    %c0_i32 = arith.constant 0 : i32
    %c0_i32_0 = arith.constant 0 : i32
    %c0_i32_1 = arith.constant 0 : i32
    return %c0_i32, %c0_i32_0 : i32, i32
  }
  func.func @transform_5(%arg0: i32) -> (i32, i32) {
    %c0_i32 = arith.constant 0 : i32
    %c0_i32_0 = arith.constant 0 : i32
    %c0_i32_1 = arith.constant 0 : i32
    return %c0_i32, %c0_i32_0 : i32, i32
  }
  func.func @transform_6(%arg0: i32) -> (i32, i32) {
    %c0_i32 = arith.constant 0 : i32
    %c0_i32_0 = arith.constant 0 : i32
    %c0_i32_1 = arith.constant 0 : i32
    return %c0_i32, %c0_i32_0 : i32, i32
  }
  func.func @transform_7(%arg0: i32) -> (i32, i32, i32, i32) {
    %c0_i32 = arith.constant 0 : i32
    %c0_i32_0 = arith.constant 0 : i32
    %c0_i32_1 = arith.constant 0 : i32
    %c0_i32_2 = arith.constant 0 : i32
    return %arg0, %c0_i32, %c0_i32_0, %c0_i32_1 : i32, i32, i32, i32
  }
}

</mosaic_0001>

<bundles_post_ra>
// kernel: tpu_custom_call.1
= control target key start
LH: loop header
LB: loop body
LE: loop exit
PB: predicated region body
PF: predicated region fallthrough
CT: control target
= control target key end

     0   :  { %s6040_s0 = inlined_call_operand.hbm [shape: f32[2,16,16,128], index: 0, kind: input, shape index: {}]   ;;  %s6041_s1 = inlined_call_operand.hbm [shape: bf16[128,128], index: 1, kind: input, shape index: {}]   ;;  %s6042_s2 = inlined_call_operand.vmem [shape: f32[1,128], index: 2, kind: input, shape index: {}]   ;;  %s6043_s3 = inlined_call_operand.hbm [shape: bf16[1152,128], index: 3, kind: input, shape index: {}]   ;;  %s6044_s4 = inlined_call_operand.vmem [shape: f32[1,128], index: 4, kind: input, shape index: {}]   ;;  %s6045_s5 = inlined_call_operand.hbm [shape: bf16[128,128], index: 5, kind: input, shape index: {}]   ;;  %s6046_s6 = inlined_call_operand.vmem [shape: f32[1,128], index: 6, kind: input, shape index: {}]   ;;  %s6047_s7 = inlined_call_operand.hbm [shape: f32[2,16,16,128], index: 7, kind: output, shape index: {}]  }
   0x1   :  { %6081 = sst [smem:[#allocation42_spill]] %s6041_s1 }
   0x2   :  { %12 = vsyncpa [#allocation3], 0 }
   0x3   :  { %14 = vsyncpa [#allocation3 + $0x1], 0 }
   0x4   :  { %15 = vsyncpa [#allocation6], 0 }
   0x5   :  { %16 = vsyncpa [#allocation9], 0 }
   0x6   :  { %17 = vsyncpa [#allocation4], 0 }
   0x7   :  { %19 = vsyncpa [#allocation4 + $0x1], 0  ;;  %s4407_s24 = smov 0   ;;  %s4409_s25 = smov 0  }
   0x8   :  { %s4411_s26 = smov 0   ;;  %s4413_s27 = smov 0  }
   0x9 LB: > { %s4428_s28 = sadd.s32 4294967295, %s4351_s27   ;;  %s2796_s29 = sadd.s32 4294967294, %s4351_s27   ;;  %s4351_s27 = sphi %s4413_s27, %s6215_s27   ;;  %s4347_s26 = sphi %s4411_s26, %s6214_s26   ;;  %s4343_s25 = sphi %s4409_s25, %s6213_s25   ;;  %s4339_s24 = sphi %s4407_s24, %s6212_s24  }
   0xa   : > { %p45_p0 = scmp.ne.s32.totalorder %s4343_s25, %s4339_s24  ;;  %p6048_p1 = scmp.eq.s32.totalorder %s4428_s28, 0 }
   0xb   : > { %p201_p3 = scmp.eq.s32.totalorder %s2796_s29, 1  ;;  %p2797_p5 = scmp.ge.s32.totalorder %s4351_s27, 1 }
   0xc   : > { %p4437_p4 = por %p6048_p1, %p45_p0  ;;  %p208_p7 = scmp.lt.s32.totalorder %s4351_s27, 3 }
   0xd   : > { %p4442_p6 = por %p201_p3, %p45_p0  ;;  %s4353_s10 = smov [#allocation5]  }
   0xe   : > { %s6082_s30 = scalar_select %p4437_p4, 1, 0 }
   0xf   : > { %s6083_s8 = scalar_select %p4442_p6, 1, 0 }
  0x10   : > { %p4447_p8 = pnand %p2797_p5, %p208_p7  ;;  %s220_s11 = sshll.u32 %s4353_s10, 4  ;;  %s221_s11 = int_to_ptr.vmem [resolvable:$true] %s220_s11 }
  0x11   : > { %s4354_s13 = smov [#allocation7]   ;;  %s4355_s15 = smov [#allocation8]  }
  0x12   : > { %s6084_s9 = scalar_select %p4447_p8, 1, 0 }
  0x13   : > { %p3983_p9 = pneg %p4447_p8  ;;  %s236_s14 = sshll.u32 %s4354_s13, 4  ;;  %s237_s14 = int_to_ptr.vmem [resolvable:$true] %s236_s14 }
  0x14   : > { %s252_s16 = sshll.u32 %s4355_s15, 4  ;;  %s4184_s17 = scalar_lea.vmem %s221_s11, 1024  ;;  %s253_s16 = int_to_ptr.vmem [resolvable:$true] %s252_s16 }
  0x15   : > { %p4456_p11 = pnand %p3983_p9, %p6048_p1  ;;  %p4185_p13 = scmp.ne.s32.totalorder %s221_s11, %s4184_s17 }
  0x16   : > { %p4192_p5 = scmp.lt.s32.totalorder %s221_s11, %s221_s11  ;;  %p4193_p7 = scmp.lt.s32.totalorder %s4184_s17, %s4184_s17 }
  0x17   : > { %p4175_p12 = pneg %p4456_p11 }
  0x18   : > { %p4194_p9 = por %p4193_p7, %p4192_p5 }
  0x19   : > { %p4187_p0 = pnand %p4185_p13, %p4175_p12 }
  0x1b   : > { %p4188_p3 = pneg %p4187_p0 }
  0x1d   : > { %p4195_p10 = pnand %p4194_p9, %p4188_p3 }
  0x1f   : > { %4198 = shalt.err (!%p4195_p10)
}
  0x20   : > { %s4356_s18 = smov 64   ;;  %s4357_s19 = smov 4  }
  0x21   : > { %s6086_s1 = sld [smem:[#allocation42_spill]]  ;;  %s4210_s22 = scalar_lea.vmem %s237_s14, 9216 }
  0x22   : > { %p4211_p1 = scmp.ne.s32.totalorder %s237_s14, %s4210_s22  ;;  %p4218_p2 = scmp.lt.s32.totalorder %s237_s14, %s237_s14 }
  0x23   : > { %p4219_p6 = scmp.lt.s32.totalorder %s4210_s22, %s4210_s22 }
  0x24   : > { %p4213_p13 = pnand %p4211_p1, %p4175_p12 }
  0x25   : > { %p4220_p5 = por %p4219_p6, %p4218_p2 }
  0x26   : > { %p4214_p0 = pneg %p4213_p13 }
  0x27   : > { %3986 = dma.hbm_to_vmem [thread:$0]  (!%p4456_p11), %s6086_s1, 1024, %s221_s11, [#allocation6], %s4356_s18, %s4356_s18, %s4357_s19  }
  0x28   : > { %p4221_p3 = pnand %p4220_p5, %p4214_p0 }
  0x2a   : > { %4224 = shalt.err (!%p4221_p3)
}
  0x2b   : > { %3989 = dma.hbm_to_vmem [thread:$0]  (!%p4456_p11), %s6043_s3, 9216, %s237_s14, [#allocation6], %s4356_s18, %s4356_s18, %s4357_s19  }
  0x2c   : > { %s4236_s10 = scalar_lea.vmem %s253_s16, 1024  ;;  %p4244_p9 = scmp.lt.s32.totalorder %s253_s16, %s253_s16 }
  0x2d   : > { %p4237_p10 = scmp.ne.s32.totalorder %s253_s16, %s4236_s10  ;;  %p4245_p13 = scmp.lt.s32.totalorder %s4236_s10, %s4236_s10 }
  0x2f   : > { %p4239_p7 = pnand %p4237_p10, %p4175_p12  ;;  %p4246_p4 = por %p4245_p13, %p4244_p9 }
  0x31   : > { %p4240_p1 = pneg %p4239_p7 }
  0x33   : > { %p4247_p2 = pnand %p4246_p4, %p4240_p1 }
  0x35   : > { %4250 = shalt.err (!%p4247_p2)
}
  0x36   : > { %3992 = dma.hbm_to_vmem [thread:$0]  (!%p4456_p11), %s6045_s5, 1024, %s253_s16, [#allocation9], %s4356_s18, %s4356_s18, %s4357_s19  }
  0x37   : > { %s4487_s14 = sadd.s32 1, %s4351_s27   ;;  %s32_s12 = sadd.s32 1, %s4347_s26 }
  0x38   : > { %s29_s15 = ssub.s32 %s4351_s27, %s4487_s14  ;;  %p39_p6 = scmp.ne.s32.totalorder %s4347_s26, %s4343_s25 }
  0x39   : > { %p30_p4 = scmp.eq.s32.totalorder %s29_s15, 0  ;;  %p40_p12 = scmp.eq.s32.totalorder %s4351_s27, 0 }
  0x3a   : > { %p4004_p0 = scmp.lt.s32.totalorder %s4351_s27, 2  ;;  %p6087_p3 = scmp.eq.s32.totalorder %s4428_s28, 1 }
  0x3b   : > { %s4497_s17 = scalar_select %p30_p4, %s4347_s26, %s32_s12  }
  0x3c   : > { %p41_p5 = por %p40_p12, %p39_p6  ;;  %p4501_p10 = por %p6087_p3, %p39_p6 }
  0x3d   : > { %s269_s21 = sand.u32 1, %s4347_s26   ;;  %s3283_s22 = sshll.u32 %s4351_s27, 12 }
  0x3e   : > { %s6088_s20 = scalar_select %p4501_p10, 1, 0 }
  0x3f   : > { %s2802_s16 = sshll.u32 %s269_s21, 8  ;;  %s4510_s23 = scalar_lea.hbm %s6040_s0, %s3283_s22 }
  0x40   : > { %s273_s29 = scalar_lea.vmem [#allocation2], %s2802_s16  ;;  %p4512_p11 = pnand %p4004_p0, %p41_p5 }
  0x41   : > { %s280_s10 = sshll.u32 %s273_s29, 4  ;;  %s4518_s13 = scalar_lea.sflag [#allocation3], %s269_s21  ;;  %s4516_s10 = int_to_ptr.vmem [resolvable:$true] %s280_s10 }
  0x42   : > { %s4251_s15 = scalar_lea.hbm %s4510_s23, 4096  ;;  %p4253_p1 = pneg %p4512_p11 }
  0x43   : > { %p4252_p7 = scmp.ne.s32.totalorder %s4510_s23, %s4251_s15  ;;  %s4256_s16 = scalar_lea.hbm %s6040_s0, 8192 }
  0x44   : > { %p4257_p2 = scmp.lt.s32.totalorder %s4510_s23, %s6040_s0  ;;  %p4258_p4 = scmp.lt.s32.totalorder %s4256_s16, %s4251_s15 }
  0x45   : > { %p4254_p9 = pnand %p4253_p1, %p4252_p7 }
  0x46   : > { %p4259_p6 = por %p4258_p4, %p4257_p2 }
  0x47   : > { %p4255_p13 = pneg %p4254_p9 }
  0x49   : > { %p4260_p12 = pnand %p4259_p6, %p4255_p13 }
  0x4b   : > { %4263 = shalt.err (!%p4260_p12)
}
  0x4c   : > { %s4264_s21 = scalar_lea.vmem %s4516_s10, 4096  ;;  %s4358_s29 = smov [#allocation2]  }
  0x4d   : > { %p4265_p0 = scmp.ne.s32.totalorder %s4516_s10, %s4264_s21  ;;  %s4269_s1 = sshll.u32 %s4358_s29, 4  ;;  %s4270_s1 = int_to_ptr.vmem [resolvable:$false] %s4269_s1 }
  0x4e   : > { %s4271_s12 = scalar_lea.vmem %s4270_s1, 8192  ;;  %p4272_p7 = scmp.lt.s32.totalorder %s4516_s10, %s4270_s1 }
  0x4f   : > { %p4267_p5 = pnand %p4265_p0, %p4253_p1  ;;  %p4273_p9 = scmp.lt.s32.totalorder %s4271_s12, %s4264_s21 }
  0x51   : > { %p4268_p3 = pneg %p4267_p5  ;;  %p4274_p10 = por %p4273_p9, %p4272_p7 }
  0x53   : > { %p4275_p8 = pnand %p4274_p10, %p4268_p3 }
  0x55   : > { %4278 = shalt.err (!%p4275_p8)
}
  0x56   : > { %s4359_s15 = smov 128   ;;  %s4360_s22 = smov 8  }
  0x57   : > { %3996 = dma.hbm_to_vmem [thread:$0]  (!%p4512_p11), %s4510_s23, 4096, %s4516_s10, %s4518_s13, %s4359_s15, %s4359_s15, %s4360_s22  }
  0x58   : > { %p6090_p1 = scmp.ne.s32.totalorder %s6084_s9, 0 }
  0x5a   : > { %292 = sbr.rel (%p6090_p1) target bundleno = 1075 (0x433), region = 48 }
  0x5f   : > { %s4542_s16 = sand.u32 1, %s4343_s25   ;;  %p6091_p8 = scmp.ne.s32.totalorder %s6082_s30, 0 }
  0x60   : > { %s2806_s1 = sshll.u32 %s4542_s16, 8  ;;  %s295_s18 = scalar_lea.sflag [#allocation3], %s4542_s16 }
  0x61   : > { %s4548_s19 = scalar_lea.vmem [#allocation2], %s2806_s1 }
  0x62   : > { %4322 = dma.done.wait (%p6091_p8), %s295_s18, 4096  }
  0x63   : > { %4324 = vsyncadd (%p6091_p8), %s295_s18, 4294963200  ;;  %p6092_p10 = scmp.eq.s32.totalorder %s4428_s28, 0 }
  0x65   : > { %4326 = dma.done.wait (%p6092_p10), [#allocation6], 10240   ;;  %p6093_p11 = pmov %p6092_p10 }
  0x66   : > { %p6094_p13 = pmov %p6092_p10 }
  0x67   : > { %4328 = vsyncadd (%p6093_p11), [#allocation6], 4294957056 }
  0x68   : > { %4330 = dma.done.wait (%p6094_p13), [#allocation9], 1024   ;;  %p6095_p2 = pmov %p6092_p10 }
  0x69   : > { %v4053_v0 = vld [vmem:[#allocation5 + $0x38] sm:$0xff]   ;;  %v4054_v1 = vld [vmem:[#allocation5 + $0x30] sm:$0xff]   ;;  %v4055_v2 = vld [vmem:[#allocation5 + $0x28] sm:$0xff]   ;;  %vm4362_vm4 = vmmov 1   ;;  %s5897_s21 = scalar_lea.vmem [#allocation10], %s2806_s1  ;;  %s3284_s29 = sshll.u32 %s4428_s28, 12 }
  0x6a   : > { %4332 = vsyncadd (%p6095_p2), [#allocation9], 4294966272  ;;  %3807 = vmatprep.subr.bf16.mxu0 %v4053_v0  ;;  %3951 = vmatprep.subr.bf16.mxu1 %v4053_v0  ;;  %v4056_v3 = vld [vmem:[#allocation5 + $0x20] sm:$0xff]   ;;  %v343_v5 = vld [vmem:[%s4548_s19 + $0x8] sm:$0xff]  ;;  %s2694_s12 = sshll.u32 %s5897_s21, 4  ;;  %s5993_s1 = scalar_lea.hbm %s6047_s7, %s3284_s29  ;;  %s5995_s12 = int_to_ptr.vmem [resolvable:$true] %s2694_s12 }
  0x6b   : > { %3808 = vmatpush3.bf16.msra.mxu0 %v4053_v0  ;;  %3959 = vmatpush3.bf16.msra.mxu1 %v4053_v0  ;;  %v342_v4 = vld [vmem:[%s4548_s19] sm:$0xff]  ;;  %v4057_v7 = vld [vmem:[#allocation5 + $0x18] sm:$0xff]   ;;  %v359_v9 = vld [vmem:[%s4548_s19 + $0x88] sm:$0xff]  ;;  %s2681_s18 = scalar_lea.sflag [#allocation4], %s4542_s16  ;;  %s4279_s28 = scalar_lea.vmem %s5995_s12, 4096 }
  0x6c   : > { %3809 = vmatprep.subr.bf16.mxu0 %v4054_v1  ;;  %3952 = vmatprep.subr.bf16.mxu1 %v4054_v1  ;;  %v374_v6 = vpack.c.bf16 %v343_v5, %v342_v4  ;;  %v358_v8 = vld [vmem:[%s4548_s19 + $0x80] sm:$0xff]  ;;  %v4058_v11 = vld [vmem:[#allocation5 + $0x10] sm:$0xff]   ;;  %v4059_v12 = vld [vmem:[#allocation5 + $0x8] sm:$0xff]   ;;  %p4280_p4 = scmp.ne.s32.totalorder %s5995_s12, %s4279_s28  ;;  %p6209_p6 = scmp.ne.s32.totalorder %s6088_s20, 0 }
  0x6d   : > { %v382_v10 = vpack.c.bf16 %v359_v9, %v358_v8  ;;  %v4060_v13 = vld [vmem:[#allocation5] sm:$0xff]   ;;  %v344_v14 = vld [vmem:[%s4548_s19 + $0x10] sm:$0xff]  ;;  %v345_v15 = vld [vmem:[%s4548_s19 + $0x18] sm:$0xff] }
  0x6e   : > { %3823 = vmatprep.mubr.bf16.mxu0 %v374_v6  ;;  %v346_v16 = vld [vmem:[%s4548_s19 + $0x20] sm:$0xff]  ;;  %v347_v17 = vld [vmem:[%s4548_s19 + $0x28] sm:$0xff]  ;;  %v360_v18 = vld [vmem:[%s4548_s19 + $0x90] sm:$0xff]  ;;  %v375_v24 = vpack.c.bf16 %v345_v15, %v344_v14  ;;  %p4281_p12 = pnand %p4280_p4, %p6209_p6 }
  0x6f   : > { %3810 = vmatpush3.bf16.msra.mxu0 %v4054_v1  ;;  %3960 = vmatpush3.bf16.msra.mxu1 %v4054_v1  ;;  %v361_v19 = vld [vmem:[%s4548_s19 + $0x98] sm:$0xff]  ;;  %v362_v20 = vld [vmem:[%s4548_s19 + $0xa0] sm:$0xff]  ;;  %v363_v21 = vld [vmem:[%s4548_s19 + $0xa8] sm:$0xff]  ;;  %v376_v25 = vpack.c.bf16 %v347_v17, %v346_v16 }
  0x70   : > { %3811 = vmatprep.subr.bf16.mxu0 %v4055_v2  ;;  %3953 = vmatprep.subr.bf16.mxu1 %v4055_v2  ;;  %v4069_v22 = vld [vmem:[#allocation7 + $0xf8] sm:$0xff]   ;;  %v383_v26 = vpack.c.bf16 %v361_v19, %v360_v18  ;;  %v384_v28 = vpack.c.bf16 %v363_v21, %v362_v20  ;;  %v4063_v29 = vld [vmem:[#allocation7 + $0x70] sm:$0xff]   ;;  %v350_v33 = vld [vmem:[%s4548_s19 + $0x40] sm:$0xff]  ;;  %v6052_v18 = vmov 0.0|0.0   ;;  %p4282_p0 = pneg %p4281_p12 }
  0x71   : > { %3839 = vmatprep.mubr.bf16.mxu1 %v382_v10  ;;  %v4061_v23 = vld [vmem:[#allocation7 + $0x78] sm:$0xff]   ;;  %v348_v30 = vld [vmem:[%s4548_s19 + $0x30] sm:$0xff]  ;;  %v351_v34 = vld [vmem:[%s4548_s19 + $0x48] sm:$0xff] }
  0x72   : > { %v4062_v27 = vld [vmem:[#allocation7 + $0x38] sm:$0xff]   ;;  %v364_v35 = vld [vmem:[%s4548_s19 + $0xb0] sm:$0xff]  ;;  %v366_v38 = vld [vmem:[%s4548_s19 + $0xc0] sm:$0xff]  ;;  %v378_v45 = vpack.c.bf16 %v351_v34, %v350_v33 }
  0x73   : > { %3812 = vmatpush3.bf16.msra.mxu0 %v4055_v2  ;;  %3961 = vmatpush3.bf16.msra.mxu1 %v4055_v2  ;;  %v349_v31 = vld [vmem:[%s4548_s19 + $0x38] sm:$0xff]  ;;  %v4073_v37 = vld [vmem:[#allocation7 + $0xf0] sm:$0xff]   ;;  %v367_v39 = vld [vmem:[%s4548_s19 + $0xc8] sm:$0xff] }
  0x74   : > { %3813 = vmatprep.subr.bf16.mxu0 %v4056_v3  ;;  %3954 = vmatprep.subr.bf16.mxu1 %v4056_v3  ;;  %v4071_v32 = vld [vmem:[#allocation7 + $0xb8] sm:$0xff]   ;;  %v4064_v40 = vld [vmem:[#allocation7 + $0x30] sm:$0xff]   ;;  %v4065_v41 = vld [vmem:[#allocation7 + $0x68] sm:$0xff]   ;;  %v377_v43 = vpack.c.bf16 %v349_v31, %v348_v30  ;;  %v386_v48 = vpack.c.bf16 %v367_v39, %v366_v38 }
  0x75   : > { %v365_v36 = vld [vmem:[%s4548_s19 + $0xb8] sm:$0xff]  ;;  %v4075_v42 = vld [vmem:[#allocation7 + $0xb0] sm:$0xff]   ;;  %v4077_v44 = vld [vmem:[#allocation7 + $0xe8] sm:$0xff]  }
  0x76   : > { %v385_v46 = vpack.c.bf16 %v365_v36, %v364_v35  ;;  %v4066_v47 = vld [vmem:[#allocation7 + $0x28] sm:$0xff]   ;;  %v4067_v49 = vld [vmem:[#allocation7 + $0x60] sm:$0xff]   ;;  %v352_v50 = vld [vmem:[%s4548_s19 + $0x50] sm:$0xff] }
  0x77   : > { %3814 = vmatpush3.bf16.msra.mxu0 %v4056_v3  ;;  %3962 = vmatpush3.bf16.msra.mxu1 %v4056_v3  ;;  %v353_v51 = vld [vmem:[%s4548_s19 + $0x58] sm:$0xff]  ;;  %v4079_v52 = vld [vmem:[#allocation7 + $0xa8] sm:$0xff]   ;;  %v354_v53 = vld [vmem:[%s4548_s19 + $0x60] sm:$0xff] }
  0x78   : > { %3815 = vmatprep.subr.bf16.mxu0 %v4057_v7  ;;  %3955 = vmatprep.subr.bf16.mxu1 %v4057_v7  ;;  %v355_v54 = vld [vmem:[%s4548_s19 + $0x68] sm:$0xff]  ;;  %v368_v55 = vld [vmem:[%s4548_s19 + $0xd0] sm:$0xff]  ;;  %v369_v56 = vld [vmem:[%s4548_s19 + $0xd8] sm:$0xff]  ;;  %v379_v63 = vpack.c.bf16 %v353_v51, %v352_v50 }
  0x79   : > { %v4068_v57 = vld [vmem:[#allocation7 + $0x20] sm:$0xff]   ;;  %v371_v60 = vld [vmem:[%s4548_s19 + $0xe8] sm:$0xff]  ;;  %v4070_v61 = vld [vmem:[#allocation7 + $0x58] sm:$0xff]   ;;  %v380_v1 = vpack.c.bf16 %v355_v54, %v354_v53  ;;  %v387_v2 = vpack.c.bf16 %v369_v56, %v368_v55 }
  0x7a   : > { %v4081_v58 = vld [vmem:[#allocation7 + $0xe0] sm:$0xff]   ;;  %v4072_v0 = vld [vmem:[#allocation7 + $0x18] sm:$0xff]   ;;  %v4074_v3 = vld [vmem:[#allocation7 + $0x50] sm:$0xff]  }
  0x7b   : > { %3816 = vmatpush3.bf16.msra.mxu0 %v4057_v7  ;;  %3963 = vmatpush3.bf16.msra.mxu1 %v4057_v7  ;;  %v370_v59 = vld [vmem:[%s4548_s19 + $0xe0] sm:$0xff]  ;;  %v356_v5 = vld [vmem:[%s4548_s19 + $0x70] sm:$0xff]  ;;  %v357_v6 = vld [vmem:[%s4548_s19 + $0x78] sm:$0xff] }
  0x7c   : > { %3817 = vmatprep.subr.bf16.mxu0 %v4058_v11  ;;  %3956 = vmatprep.subr.bf16.mxu1 %v4058_v11  ;;  %v4083_v62 = vld [vmem:[#allocation7 + $0xa0] sm:$0xff]   ;;  %v388_v4 = vpack.c.bf16 %v371_v60, %v370_v59  ;;  %v372_v7 = vld [vmem:[%s4548_s19 + $0xf0] sm:$0xff]  ;;  %v373_v8 = vld [vmem:[%s4548_s19 + $0xf8] sm:$0xff] }
  0x7d   : > { %v4076_v9 = vld [vmem:[#allocation7 + $0x10] sm:$0xff]   ;;  %v4078_v10 = vld [vmem:[#allocation7 + $0x48] sm:$0xff]   ;;  %v4082_v14 = vld [vmem:[#allocation7 + $0x40] sm:$0xff]  }
  0x7e   : > { %v4084_v15 = vld [vmem:[#allocation7] sm:$0xff]   ;;  %v4085_v16 = vld [vmem:[#allocation7 + $0xd8] sm:$0xff]   ;;  %v4087_v19 = vld [vmem:[#allocation7 + $0xd0] sm:$0xff]  }
  0x7f   : > { %3818 = vmatpush3.bf16.msra.mxu0 %v4058_v11  ;;  %3964 = vmatpush3.bf16.msra.mxu1 %v4058_v11  ;;  %v381_v11 = vpack.c.bf16 %v357_v6, %v356_v5  ;;  %v4086_v17 = vld [vmem:[#allocation7 + $0x98] sm:$0xff]   ;;  %v4088_v20 = vld [vmem:[#allocation7 + $0x90] sm:$0xff]   ;;  %v4091_v21 = vld [vmem:[#allocation7 + $0xc8] sm:$0xff]  }
  0x80   : > { %3819 = vmatprep.subr.bf16.mxu0 %v4059_v12  ;;  %3957 = vmatprep.subr.bf16.mxu1 %v4059_v12  ;;  %v4098_v30 = vld [vmem:[#allocation7 + $0x128] sm:$0xff]   ;;  %v4099_v31 = vld [vmem:[#allocation7 + $0x160] sm:$0xff]   ;;  %v4101_v33 = vld [vmem:[#allocation7 + $0x1f8] sm:$0xff]  }
  0x81   : > { %v4103_v34 = vld [vmem:[#allocation7 + $0x158] sm:$0xff]   ;;  %v4107_v36 = vld [vmem:[#allocation7 + $0x150] sm:$0xff]   ;;  %v4111_v38 = vld [vmem:[#allocation7 + $0x148] sm:$0xff]  }
  0x82   : > { %v4104_v35 = vld [vmem:[#allocation7 + $0x118] sm:$0xff]   ;;  %v4112_v39 = vld [vmem:[#allocation7 + $0x108] sm:$0xff]  }
  0x83   : > { %3820 = vmatpush3.bf16.msra.mxu0 %v4059_v12  ;;  %3965 = vmatpush3.bf16.msra.mxu1 %v4059_v12  ;;  %v4080_v12 = vld [vmem:[#allocation7 + $0x8] sm:$0xff]   ;;  %v4606_v54 = vld [vmem:[#allocation7 + $0x238] sm:$0xff]  }
  0x84   : > { %3821 = vmatprep.subr.bf16.mxu0 %v4060_v13  ;;  %3958 = vmatprep.subr.bf16.mxu1 %v4060_v13  ;;  %6096 = vst [vmem:[#allocation15_spill] sm:$0xff] %v4606_v54 }
  0x87   : > { %3822 = vmatpush3.bf16.msra.mxu0 %v4060_v13  ;;  %3966 = vmatpush3.bf16.msra.mxu1 %v4060_v13  ;;  %v389_v13 = vpack.c.bf16 %v373_v8, %v372_v7 }
  0x88   : > { %3423 = vmatprep.subr.bf16.mxu0 %v4069_v22  ;;  %3311 = vmatprep.subr.bf16.mxu1 %v4061_v23  ;;  %v4092_v22 = vld [vmem:[#allocation7 + $0x88] sm:$0xff]   ;;  %v4089_v23 = vld [vmem:[#allocation7 + $0x178] sm:$0xff]  }
  0x8a   : > { %3824 = vmatmul.mubr.bf16.vlgmr.msra.gmra.mxu0 %v375_v24  ;;  %3840 = vmatmul.mubr.bf16.vlgmr.msra.gmra.mxu1 %v383_v26  ;;  %v4093_v24 = vld [vmem:[#allocation7 + $0xc0] sm:$0xff]   ;;  %v4090_v26 = vld [vmem:[#allocation7 + $0x138] sm:$0xff]  }
  0x8b   : > { %3827 = vmatprep.mubr.bf16.mxu0 %v376_v25  ;;  %3843 = vmatprep.mubr.bf16.mxu1 %v384_v28  ;;  %v4094_v25 = vld [vmem:[#allocation7 + $0x80] sm:$0xff]   ;;  %v4096_v28 = vld [vmem:[#allocation7 + $0x130] sm:$0xff]  }
  0x8c   : > { %3312 = vmatpush3.bf16.msra.mxu1 %v4062_v27  ;;  %3424 = vmatpush3.bf16.msra.mxu0 %v4071_v32  ;;  %v4095_v27 = vld [vmem:[#allocation7 + $0x170] sm:$0xff]   ;;  %v4100_v32 = vld [vmem:[#allocation7 + $0x120] sm:$0xff]  }
  0x8d   : > { %3313 = vmatprep.subr.bf16.mxu1 %v4063_v29  ;;  %3425 = vmatprep.subr.bf16.mxu0 %v4073_v37  ;;  %v4097_v29 = vld [vmem:[#allocation7 + $0x168] sm:$0xff]   ;;  %v4108_v37 = vld [vmem:[#allocation7 + $0x110] sm:$0xff]  }
  0x90   : > { %3314 = vmatpush3.bf16.msra.mxu1 %v4064_v40  ;;  %3426 = vmatpush3.bf16.msra.mxu0 %v4075_v42  ;;  %v4115_v40 = vld [vmem:[#allocation7 + $0x140] sm:$0xff]  }
  0x91   : > { %3315 = vmatprep.subr.bf16.mxu1 %v4065_v41  ;;  %3427 = vmatprep.subr.bf16.mxu0 %v4077_v44  ;;  %v4116_v41 = vld [vmem:[#allocation7 + $0x100] sm:$0xff]  }
  0x92   : > { %3828 = vmatmul.mubr.bf16.gmra.mxu0 %v377_v43  ;;  %3844 = vmatmul.mubr.bf16.gmra.mxu1 %v385_v46  ;;  %v4599_v44 = vld [vmem:[%s6042_s2] ss:$0 sm:$0xff]  ;;  %v686_v46 = vlaneseq }
  0x93   : > { %3831 = vmatprep.mubr.bf16.mxu0 %v378_v45  ;;  %3847 = vmatprep.mubr.bf16.mxu1 %v386_v48 }
  0x94   : > { %3316 = vmatpush3.bf16.msra.mxu1 %v4066_v47  ;;  %3428 = vmatpush3.bf16.msra.mxu0 %v4079_v52  ;;  %v4608_v55 = vshrl.u32 %v686_v46, 7 }
  0x95   : > { %3317 = vmatprep.subr.bf16.mxu1 %v4067_v49  ;;  %3429 = vmatprep.subr.bf16.mxu0 %v4081_v58 }
  0x96   : > { %v788_v60 = vadd.s32 8, %v4608_v55  ;;  %vm754_vm0 = vcmp.lt.s32.totalorder %v4608_v55, 7  ;;  %vm688_vm1 = vcmp.lt.s32.totalorder %v4608_v55, 1  ;;  %vm3285_vm2 = vcmp.ne.s32.totalorder %v4608_v55, 0 }
  0x97   : > { %vm4656_vm5 = vmpackc.low %vm4362_vm4, %vm3285_vm2 }
  0x98   : > { %3318 = vmatpush3.bf16.msra.mxu1 %v4068_v57  ;;  %3430 = vmatpush3.bf16.msra.mxu0 %v4083_v62  ;;  %vm3286_vm3 = vcmp.ne.s32.totalorder %v788_v60, 15 }
  0x99   : > { %3319 = vmatprep.subr.bf16.mxu1 %v4070_v61  ;;  %3431 = vmatprep.subr.bf16.mxu0 %v4085_v16  ;;  %vm4667_vm6 = vmpackc.low %vm3286_vm3, %vm4362_vm4 }
  0x9a   : > { %3832 = vmatmul.mubr.bf16.gmra.mxu0 %v379_v63  ;;  %3848 = vmatmul.mubr.bf16.gmra.mxu1 %v387_v2 }
  0x9b   : > { %3835 = vmatprep.mubr.bf16.mxu0 %v380_v1  ;;  %3851 = vmatprep.mubr.bf16.mxu1 %v388_v4 }
  0x9c   : > { %3320 = vmatpush3.bf16.msra.mxu1 %v4072_v0  ;;  %3432 = vmatpush3.bf16.msra.mxu0 %v4086_v17 }
  0x9d   : > { %3321 = vmatprep.subr.bf16.mxu1 %v4074_v3  ;;  %3433 = vmatprep.subr.bf16.mxu0 %v4087_v19 }
  0xa0   : > { %3322 = vmatpush3.bf16.msra.mxu1 %v4076_v9  ;;  %3434 = vmatpush3.bf16.msra.mxu0 %v4088_v20 }
  0xa1   : > { %3323 = vmatprep.subr.bf16.mxu1 %v4078_v10  ;;  %3435 = vmatprep.subr.bf16.mxu0 %v4091_v21 }
  0xa2   : > { %3836 = vmatmul.mubr.bf16.gmra.mxu0 %v381_v11  ;;  %3852 = vmatmul.mubr.bf16.gmra.mxu1 %v389_v13 }
  0xa3   : > { %1531 = vmatprep.mubr.bf16.mxu1 %v6052_v18 }
  0xa4   : > { %3324 = vmatpush3.bf16.msra.mxu1 %v4080_v12  ;;  %3436 = vmatpush3.bf16.msra.mxu0 %v4092_v22 }
  0xa5   : > { %3325 = vmatprep.subr.bf16.mxu1 %v4082_v14  ;;  %3437 = vmatprep.subr.bf16.mxu0 %v4093_v24 }
  0xa8   : > { %3326 = vmatpush3.bf16.msra.mxu1 %v4084_v15  ;;  %3438 = vmatpush3.bf16.msra.mxu0 %v4094_v25 }
  0xa9   : > { %3535 = vmatprep.subr.bf16.mxu1 %v4089_v23  ;;  %3647 = vmatprep.subr.bf16.mxu0 %v4101_v33  ;;  %v4102_v33 = vld [vmem:[#allocation7 + $0x1b8] sm:$0xff]  }
  0xab   : > { %1532 = vmatmul.mubr.bf16.vlgmr.msra.gmra.mxu1 %v6052_v18 }
  0xac   : > { %3536 = vmatpush3.bf16.msra.mxu1 %v4090_v26  ;;  %v6054_v26 = vmov 0.0  }
  0xad   : > { %3537 = vmatprep.subr.bf16.mxu1 %v4095_v27 }
  0xb0   : > { %3538 = vmatpush3.bf16.msra.mxu1 %v4096_v28 }
  0xb1   : > { %3539 = vmatprep.subr.bf16.mxu1 %v4097_v29 }
  0xb4   : > { %3540 = vmatpush3.bf16.msra.mxu1 %v4098_v30 }
  0xb5   : > { %3541 = vmatprep.subr.bf16.mxu1 %v4099_v31 }
  0xb8   : > { %3542 = vmatpush3.bf16.msra.mxu1 %v4100_v32 }
  0xb9   : > { %3543 = vmatprep.subr.bf16.mxu1 %v4103_v34 }
  0xbc   : > { %3544 = vmatpush3.bf16.msra.mxu1 %v4104_v35 }
  0xbd   : > { %3545 = vmatprep.subr.bf16.mxu1 %v4107_v36 }
  0xc0   : > { %3546 = vmatpush3.bf16.msra.mxu1 %v4108_v37 }
  0xc1   : > { %3547 = vmatprep.subr.bf16.mxu1 %v4111_v38  ;;  %v4105_v38 = vld [vmem:[#allocation7 + $0x1f0] sm:$0xff]  }
  0xc4   : > { %3548 = vmatpush3.bf16.msra.mxu1 %v4112_v39 }
  0xc5   : > { %3549 = vmatprep.subr.bf16.mxu1 %v4115_v40 }
  0xc8   : > { %3550 = vmatpush3.bf16.msra.mxu1 %v4116_v41 }
  0xc9   : > { %3855 = vmatprep.subr.bf16.mxu1 %v4606_v54 }
 0x14a   : > { %v3825_v42 = vpop.f32.mrf.mxu0  ;;  %v3841_v43 = vpop.f32.mrf.mxu1 }
 0x14b   : > { %v504_v50 = vadd.f32 %v3825_v42, %v4599_v44  ;;  %v568_v3 = vadd.f32 %v3841_v43, %v4599_v44 }
 0x14c   : > { %v495_v45 = vpop.f32.mrf.mxu0  ;;  %v559_v48 = vpop.f32.mrf.mxu1 }
 0x14d   : > { %v496_v47 = vadd.f32 %v4599_v44, %v495_v45  ;;  %v4613_v61 = vmax.f32 %v504_v50, 0.0  ;;  %v560_v4 = vadd.f32 %v4599_v44, %v559_v48  ;;  %v4645_v16 = vmax.f32 %v568_v3, 0.0  ;;  %v4109_v3 = vld [vmem:[#allocation7 + $0x1e8] sm:$0xff]  }
 0x14e   : > { %v3826_v49 = vpop.f32.mrf.mxu0  ;;  %v3842_v53 = vpop.f32.mrf.mxu1 }
 0x14f   : > { %v4603_v51 = vmax.f32 %v496_v47, 0.0  ;;  %v507_v52 = vadd.f32 %v3826_v49, %v4599_v44  ;;  %v656_v10 = vrot.slane %v4613_v61, 7  ;;  %v4647_v17 = vmax.f32 %v560_v4, 0.0 }
 0x150   : > { %v498_v56 = vpop.f32.mrf.mxu0  ;;  %v562_v58 = vpop.f32.mrf.mxu1  ;;  %v571_v19 = vadd.f32 %v3842_v53, %v4599_v44  ;;  %v724_v45 = vrot.slane %v4613_v61, 1 }
 0x151   : > { %v499_v57 = vadd.f32 %v4599_v44, %v498_v56  ;;  %v722_v62 = vrot.slane %v4603_v51, 1  ;;  %v4616_v63 = vmax.f32 %v507_v52, 0.0  ;;  %v654_v5 = vrot.slane %v4603_v51, 7 }
 0x152   : > { %v3829_v59 = vpop.f32.mrf.mxu0  ;;  %v4618_v0 = vpop.f32.mrf.mxu1  ;;  %v4691_v42 = vmax.f32 %v571_v19, 0.0  ;;  %v563_v43 = vadd.f32 %v4599_v44, %v562_v58  ;;  %v4106_v58 = vld [vmem:[#allocation7 + $0x1b0] sm:$0xff]  }
 0x153   : > { %v4621_v1 = vmax.f32 %v499_v57, 0.0  ;;  %v787_v11 = vsel %vm754_vm0, 0.0, %v722_v62  ;;  %v657_v12 = vrot.slane %v4616_v63, 7  ;;  %v721_v20 = vsel %vm688_vm1, 0.0, %v654_v5 }
 0x154   : > { %v511_v2 = vpop.f32.mrf.mxu0  ;;  %v4628_v6 = vpop.f32.mrf.mxu1  ;;  %v520_v21 = vadd.f32 %v3829_v59, %v4599_v44  ;;  %v2959_v27 = vpack.c.bf16 %v787_v11, %v6054_v26  ;;  %v4673_v32 = vpack.c.bf16 %v4616_v63, %v4613_v61  ;;  %v725_v39 = vrot.slane %v4616_v63, 1 }
 0x155   : > { %v655_v7 = vrot.slane %v4621_v1, 7  ;;  %v4633_v9 = vpack.c.bf16 %v4621_v1, %v4603_v51  ;;  %v512_v13 = vadd.f32 %v4599_v44, %v511_v2  ;;  %v723_v34 = vrot.slane %v4621_v1, 1 }
 0x156   : > { %v3830_v8 = vpop.f32.mrf.mxu0  ;;  %v4662_v25 = vpop.f32.mrf.mxu1  ;;  %6101 = vst [vmem:[#allocation16_spill] sm:$0xff] %v4673_v32  ;;  %v718_v37 = vsel %vm688_vm1, %v656_v10, %v657_v12  ;;  %v4695_v46 = vmax.f32 %v520_v21, 0.0 }
 0x157   : > { %1539 = vmatprep.mubr.bf16.mxu1 %v4633_v9  ;;  %v720_v15 = vsel %vm688_vm1, %v654_v5, %v655_v7  ;;  %v719_v24 = vsel %vm688_vm1, %v655_v7, %v656_v10  ;;  %v523_v28 = vadd.f32 %v3830_v8, %v4599_v44  ;;  %v4676_v35 = vmax.f32 %v512_v13, 0.0 }
 0x158   : > { %v514_v14 = vpop.f32.mrf.mxu0  ;;  %v2895_v30 = vpack.c.bf16 %v720_v15, %v721_v20  ;;  %v4689_v41 = vpack.c.bf16 %v718_v37, %v719_v24  ;;  %v4702_v49 = vpop.f32.mrf.mxu1  ;;  %v785_v61 = vsel %vm754_vm0, %v723_v34, %v724_v45  ;;  %v786_v1 = vsel %vm754_vm0, %v722_v62, %v723_v34 }
 0x159   : > { %v515_v22 = vadd.f32 %v4599_v44, %v514_v14  ;;  %v4704_v50 = vmax.f32 %v523_v28, 0.0  ;;  %v658_v59 = vrot.slane %v4676_v35, 7  ;;  %v784_v7 = vsel %vm754_vm0, %v724_v45, %v725_v39 }
 0x15a   : > { %v3833_v29 = vpop.f32.mrf.mxu0  ;;  %2896 = vmatmul.mubr.msk.bf16.gmra.mxu1 %vm4656_vm5, %v2895_v30  ;;  %2956 = vmatprep.mubr.msk.bf16.mxu0 %vm4656_vm5, %v2895_v30  ;;  %6102 = vst [vmem:[#allocation17_spill] sm:$0xff] %v4689_v41  ;;  %v4720_v2 = vpop.f32.mrf.mxu1  ;;  %v6057_v8 = vrot.slane %v4691_v42, 7  ;;  %v4728_v10 = vmax.f32 %v563_v43, 0.0  ;;  %v660_v51 = vrot.slane %v4695_v46, 7  ;;  %v726_v62 = vrot.slane %v4676_v35, 1  ;;  %v4110_v30 = vld [vmem:[#allocation7 + $0x1a8] sm:$0xff]  }
 0x15b   : > { %v4678_v36 = vmax.f32 %v515_v22, 0.0  ;;  %1547 = vmatprep.mubr.bf16.mxu1 %v4673_v32  ;;  %2960 = vmatmul.mubr.msk.bf16.vlgmr.msra.gmra.mxu0 %vm4667_vm6, %v2959_v27  ;;  %v536_v52 = vadd.f32 %v3833_v29, %v4599_v44  ;;  %v728_v14 = vrot.slane %v4695_v46, 1  ;;  %v661_v15 = vrot.slane %v4704_v50, 7 }
 0x15c   : > { %v527_v40 = vpop.f32.mrf.mxu0  ;;  %2964 = vmatprep.mubr.msk.bf16.mxu0 %vm4656_vm5, %v4689_v41  ;;  %3648 = vmatpush3.bf16.msra.mxu0 %v4102_v33  ;;  %v4741_v20 = vpack.c.bf16 %v785_v61, %v786_v1  ;;  %v717_v28 = vsel %vm688_vm1, %v657_v12, %v658_v59  ;;  %v4754_v29 = vpop.f32.mrf.mxu1  ;;  %v729_v33 = vrot.slane %v4704_v50, 1  ;;  %v4773_v12 = vpack.c.bf16 %v4704_v50, %v4695_v46 }
 0x15d   : > { %v659_v47 = vrot.slane %v4678_v36, 7  ;;  %v528_v60 = vadd.f32 %v4599_v44, %v527_v40  ;;  %3649 = vmatprep.subr.bf16.mxu0 %v4105_v38  ;;  %v4739_v19 = vmax.f32 %v536_v52, 0.0  ;;  %v727_v22 = vrot.slane %v4678_v36, 1  ;;  %v4113_v40 = vld [vmem:[#allocation7 + $0x1e0] sm:$0xff]  }
 0x15e   : > { %v3834_v53 = vpop.f32.mrf.mxu0  ;;  %v4748_v27 = vpack.c.bf16 %v4678_v36, %v4676_v35  ;;  %6105 = vst [vmem:[#allocation20_spill] sm:$0xff] %v4773_v12  ;;  %v783_v45 = vsel %vm754_vm0, %v725_v39, %v726_v62  ;;  %v714_v46 = vsel %vm688_vm1, %v660_v51, %v661_v15 }
 0x15f   : > { %v539_v4 = vadd.f32 %v3834_v53, %v4599_v44  ;;  %v716_v13 = vsel %vm688_vm1, %v658_v59, %v659_v47  ;;  %v4744_v24 = vmax.f32 %v528_v60, 0.0  ;;  %v664_v53 = vrot.slane %v4739_v19, 7 }
 0x160   : > { %v530_v5 = vpop.f32.mrf.mxu0  ;;  %3650 = vmatpush3.bf16.msra.mxu0 %v4106_v58  ;;  %6103 = vst [vmem:[#allocation18_spill] sm:$0xff] %v4748_v27  ;;  %v4762_v37 = vpack.c.bf16 %v716_v13, %v717_v28  ;;  %v732_v39 = vrot.slane %v4739_v19, 1  ;;  %v715_v61 = vsel %vm688_vm1, %v659_v47, %v660_v51  ;;  %v781_v1 = vsel %vm754_vm0, %v727_v22, %v728_v14 }
 0x161   : > { %v531_v11 = vadd.f32 %v4599_v44, %v530_v5  ;;  %3651 = vmatprep.subr.bf16.mxu0 %v4109_v3  ;;  %v4757_v34 = vmax.f32 %v539_v4, 0.0  ;;  %v662_v60 = vrot.slane %v4744_v24, 7  ;;  %v4798_v3 = vpop.f32.mrf.mxu1  ;;  %v4114_v4 = vld [vmem:[#allocation7 + $0x1a0] sm:$0xff]   ;;  %v730_v5 = vrot.slane %v4744_v24, 1 }
 0x162   : > { %v3837_v21 = vpop.f32.mrf.mxu0  ;;  %2900 = vmatmul.mubr.msk.bf16.gmra.mxu1 %vm4656_vm5, %v4689_v41  ;;  %6104 = vst [vmem:[#allocation19_spill] sm:$0xff] %v4762_v37  ;;  %v782_v36 = vsel %vm754_vm0, %v726_v62, %v727_v22  ;;  %v4811_v38 = vpack.c.bf16 %v783_v45, %v784_v7  ;;  %v4813_v57 = vpack.c.bf16 %v714_v46, %v715_v61  ;;  %v4119_v45 = vld [vmem:[#allocation7 + $0x1d0] sm:$0xff]  }
 0x163   : > { %v4765_v43 = vmax.f32 %v531_v11, 0.0  ;;  %1555 = vmatprep.mubr.bf16.mxu1 %v4748_v27  ;;  %2968 = vmatmul.mubr.msk.bf16.gmra.mxu0 %vm4667_vm6, %v4741_v20  ;;  %v665_v11 = vrot.slane %v4757_v34, 7  ;;  %v552_v13 = vadd.f32 %v3837_v21, %v4599_v44  ;;  %v584_v21 = vadd.f32 %v4618_v0, %v4599_v44  ;;  %v594_v63 = vpop.f32.mrf.mxu1 }
 0x164   : > { %v543_v35 = vpop.f32.mrf.mxu0  ;;  %2972 = vmatprep.mubr.msk.bf16.mxu0 %vm4656_vm5, %v4762_v37  ;;  %3652 = vmatpush3.bf16.msra.mxu0 %v4110_v30  ;;  %6106 = vst [vmem:[#allocation21_spill] sm:$0xff] %v4811_v38  ;;  %6107 = vst [vmem:[#allocation22_spill] sm:$0xff] %v4813_v57  ;;  %v733_v62 = vrot.slane %v4757_v34, 1  ;;  %v713_v0 = vsel %vm688_vm1, %v661_v15, %v662_v60  ;;  %v779_v7 = vsel %vm754_vm0, %v729_v33, %v730_v5 }
 0x165   : > { %v544_v58 = vadd.f32 %v4599_v44, %v543_v35  ;;  %3653 = vmatprep.subr.bf16.mxu0 %v4113_v40  ;;  %v4117_v35 = vld [vmem:[#allocation7 + $0x1d8] sm:$0xff]   ;;  %v663_v47 = vrot.slane %v4765_v43, 7  ;;  %v731_v51 = vrot.slane %v4765_v43, 1  ;;  %v4820_v40 = vpack.c.bf16 %v781_v1, %v782_v36  ;;  %v4851_v61 = vpop.f32.mrf.mxu1 }
 0x166   : > { %v3838_v59 = vpop.f32.mrf.mxu0  ;;  %v587_v36 = vadd.f32 %v4662_v25, %v4599_v44 }
 0x167   : > { %v555_v18 = vadd.f32 %v3838_v59, %v4599_v44  ;;  %v4809_v26 = vmax.f32 %v544_v58, 0.0  ;;  %6108 = vst [vmem:[#allocation23_spill] sm:$0xff] %v4820_v40  ;;  %v780_v59 = vsel %vm754_vm0, %v728_v14, %v729_v33  ;;  %v4118_v58 = vld [vmem:[#allocation7 + $0x198] sm:$0xff]   ;;  %v710_v14 = vsel %vm688_vm1, %v664_v53, %v665_v11 }
 0x168   : > { %v546_v28 = vpop.f32.mrf.mxu0  ;;  %3654 = vmatpush3.bf16.msra.mxu0 %v4114_v4  ;;  %v712_v50 = vsel %vm688_vm1, %v662_v60, %v663_v47  ;;  %v711_v15 = vsel %vm688_vm1, %v663_v47, %v664_v53  ;;  %v777_v33 = vsel %vm754_vm0, %v731_v51, %v732_v39  ;;  %v778_v1 = vsel %vm754_vm0, %v730_v5, %v731_v51  ;;  %v4120_v47 = vld [vmem:[#allocation7 + $0x190] sm:$0xff]  }
 0x169   : > { %v547_v30 = vadd.f32 %v4599_v44, %v546_v28  ;;  %v4824_v28 = vmax.f32 %v552_v13, 0.0  ;;  %3655 = vmatprep.subr.bf16.mxu0 %v4117_v35  ;;  %v4837_v46 = vmax.f32 %v555_v18, 0.0  ;;  %v666_v18 = vrot.slane %v4809_v26, 7 }
 0x16a   : > { %2904 = vmatmul.mubr.msk.bf16.gmra.mxu1 %vm4656_vm5, %v4762_v37  ;;  %v4859_v60 = vmax.f32 %v584_v21, 0.0  ;;  %v576_v53 = vadd.f32 %v4599_v44, %v4628_v6  ;;  %v4866_v13 = vpack.c.bf16 %v4757_v34, %v4739_v19  ;;  %v579_v35 = vadd.f32 %v4599_v44, %v4702_v49 }
 0x16b   : > { %v4818_v22 = vmax.f32 %v547_v30, 0.0  ;;  %1563 = vmatprep.mubr.bf16.mxu1 %v4773_v12  ;;  %2976 = vmatmul.mubr.msk.bf16.gmra.mxu0 %vm4667_vm6, %v4811_v38  ;;  %v668_v5 = vrot.slane %v4824_v28, 7  ;;  %v6056_v51 = vrot.slane %v4809_v26, 1  ;;  %v4876_v6 = vpack.c.bf16 %v4765_v43, %v4744_v24 }
 0x16c   : > { %2980 = vmatprep.mubr.msk.bf16.mxu0 %vm4656_vm5, %v4813_v57  ;;  %6109 = vst [vmem:[#allocation24_spill] sm:$0xff] %v4866_v13  ;;  %3656 = vmatpush3.bf16.msra.mxu0 %v4118_v58  ;;  %v4878_v30 = vpack.c.bf16 %v779_v7, %v780_v59  ;;  %v6055_v21 = vrot.slane %v4837_v46, 7  ;;  %v4881_v56 = vpack.c.bf16 %v712_v50, %v713_v0  ;;  %v607_v58 = vpop.f32.mrf.mxu1  ;;  %v4891_v43 = vmax.f32 %v576_v53, 0.0  ;;  %v4122_v59 = vld [vmem:[#allocation7 + $0x1c8] sm:$0xff]  }
 0x16d   : > { %v667_v4 = vrot.slane %v4818_v22, 7  ;;  %6110 = vst [vmem:[#allocation25_spill] sm:$0xff] %v4876_v6  ;;  %3657 = vmatprep.subr.bf16.mxu0 %v4119_v45  ;;  %v4883_v25 = vpack.c.bf16 %v710_v14, %v711_v15  ;;  %v4885_v49 = vpack.c.bf16 %v777_v33, %v778_v1  ;;  %v709_v24 = vsel %vm688_vm1, %v665_v11, %v666_v18  ;;  %v4123_v50 = vld [vmem:[#allocation7 + $0x188] sm:$0xff]   ;;  %v4124_v1 = vld [vmem:[#allocation7 + $0x1c0] sm:$0xff]  }
 0x16e   : > { %6111 = vst [vmem:[#allocation26_spill] sm:$0xff] %v4878_v30  ;;  %6112 = vst [vmem:[#allocation27_spill] sm:$0xff] %v4881_v56  ;;  %v4895_v0 = vmax.f32 %v587_v36, 0.0  ;;  %v4897_v14 = vmax.f32 %v579_v35, 0.0  ;;  %v600_v45 = vadd.f32 %v4720_v2, %v4599_v44  ;;  %v4906_v11 = vpack.c.bf16 %v4818_v22, %v4809_v26  ;;  %v3854_v53 = vpop.f32.mrf.mxu1 }
 0x16f   : > { %v708_v7 = vsel %vm688_vm1, %v666_v18, %v667_v4  ;;  %v592_v15 = vadd.f32 %v4599_v44, %v4754_v29  ;;  %v603_v33 = vadd.f32 %v4798_v3, %v4599_v44  ;;  %v595_v18 = vadd.f32 %v4599_v44, %v594_v63 }
 0x170   : > { %3658 = vmatpush3.bf16.msra.mxu0 %v4120_v47  ;;  %6113 = vst [vmem:[#allocation28_spill] sm:$0xff] %v4906_v11  ;;  %v4923_v2 = vsel %vm754_vm0, %v733_v62, %v6056_v51  ;;  %v4931_v29 = vsel %vm754_vm0, %v732_v39, %v733_v62  ;;  %v4937_v63 = vsel %vm688_vm1, %v668_v5, %v6055_v21  ;;  %v4939_v3 = vmax.f32 %v600_v45, 0.0 }
 0x171   : > { %v4944_v34 = vpack.c.bf16 %v708_v7, %v709_v24  ;;  %v674_v19 = vrot.slane %v4891_v43, 7  ;;  %v742_v39 = vrot.slane %v4891_v43, 1  ;;  %v4948_v62 = vmax.f32 %v592_v15, 0.0  ;;  %3659 = vmatprep.subr.bf16.mxu0 %v4122_v59  ;;  %v4125_v7 = vld [vmem:[#allocation7 + $0x180] sm:$0xff]  }
 0x172   : > { %2908 = vmatmul.mubr.msk.bf16.gmra.mxu1 %vm4656_vm5, %v4813_v57  ;;  %v677_v36 = vrot.slane %v4895_v0, 7  ;;  %v675_v47 = vrot.slane %v4897_v14, 7  ;;  %v6114_v45 = vrot.slane %v4645_v16, 7  ;;  %v743_v21 = vrot.slane %v4897_v14, 1 }
 0x173   : > { %1571 = vmatprep.mubr.bf16.mxu1 %v4876_v6  ;;  %2984 = vmatmul.mubr.msk.bf16.gmra.mxu0 %vm4667_vm6, %v4820_v40  ;;  %v4962_v59 = vsel %vm688_vm1, %v667_v4, %v668_v5  ;;  %v4964_v15 = vmax.f32 %v603_v33, 0.0  ;;  %v4966_v51 = vmax.f32 %v595_v18, 0.0  ;;  %v680_v35 = vrot.slane %v4939_v3, 7  ;;  %v610_v4 = vpop.f32.mrf.mxu1 }
 0x174   : > { %2988 = vmatprep.mubr.msk.bf16.mxu0 %vm4656_vm5, %v4881_v56  ;;  %v702_v24 = vsel %vm688_vm1, %v6114_v45, %v6057_v8  ;;  %3660 = vmatpush3.bf16.msra.mxu0 %v4123_v50  ;;  %v678_v52 = vrot.slane %v4948_v62, 7  ;;  %v6115_v50 = vmov %v6114_v45  ;;  %v6116_v45 = vrot.slane %v4728_v10, 7 }
 0x175   : > { %3661 = vmatprep.subr.bf16.mxu0 %v4124_v1  ;;  %v6117_v33 = vrot.slane %v4645_v16, 1  ;;  %v6118_v18 = vrot.slane %v4728_v10, 1  ;;  %v6120_v6 = vrot.slane %v4647_v17, 1  ;;  %v5229_v55 = vpack.c.bf16 %v4897_v14, %v4891_v43  ;;  %v6139_v43 = vld [vmem:[#allocation15_spill] sm:$0xff]  ;;  %v6141_v14 = vld [vmem:[#allocation16_spill] sm:$0xff] }
 0x176   : > { %v703_v8 = vsel %vm688_vm1, %v6116_v45, %v6115_v50  ;;  %v616_v50 = vadd.f32 %v4851_v61, %v4599_v44 }
 0x177   : > { %v4977_v5 = vpack.c.bf16 %v702_v24, %v703_v8  ;;  %v769_v1 = vsel %vm754_vm0, %v6118_v18, %v6117_v33  ;;  %v6119_v48 = vmov %v6118_v18  ;;  %v700_v8 = vsel %vm688_vm1, %v674_v19, %v675_v47 }
 0x178   : > { %v770_v57 = vsel %vm754_vm0, %v6120_v6, %v6119_v48  ;;  %v6121_v24 = vrot.slane %v4691_v42, 7  ;;  %v608_v18 = vadd.f32 %v4599_v44, %v607_v58  ;;  %3662 = vmatpush3.bf16.msra.mxu0 %v4125_v7  ;;  %v5005_v48 = vmax.f32 %v616_v50, 0.0 }
 0x179   : > { %v4993_v45 = vpack.c.bf16 %v769_v1, %v770_v57  ;;  %v619_v57 = vadd.f32 %v3854_v53, %v4599_v44  ;;  %v611_v6 = vadd.f32 %v4599_v44, %v610_v4  ;;  %v746_v58 = vrot.slane %v4948_v62, 1 }
 0x17a   : > { %v701_v33 = vsel %vm688_vm1, %v6121_v24, %v674_v19  ;;  %2912 = vmatmul.mubr.msk.bf16.gmra.mxu1 %vm4656_vm5, %v4881_v56  ;;  %v5016_v19 = vmax.f32 %v608_v18, 0.0  ;;  %v6122_v7 = vrot.slane %v4691_v42, 1  ;;  %v6124_v53 = vrot.slane %v4645_v16, 1 }
 0x17b   : > { %v5007_v61 = vpack.c.bf16 %v700_v8, %v701_v33  ;;  %1579 = vmatprep.mubr.bf16.mxu1 %v4866_v13  ;;  %2992 = vmatmul.mubr.msk.bf16.gmra.mxu0 %vm4667_vm6, %v4878_v30  ;;  %v681_v4 = vrot.slane %v4964_v15, 7  ;;  %v749_v8 = vrot.slane %v4964_v15, 1  ;;  %v653_v24 = vmax.f32 %v619_v57, 0.0 }
 0x17c   : > { %v767_v1 = vsel %vm754_vm0, %v6122_v7, %v742_v39  ;;  %v6123_v50 = vmov %v6122_v7  ;;  %2996 = vmatprep.mubr.msk.bf16.mxu0 %vm4656_vm5, %v4883_v25  ;;  %v5033_v33 = vmax.f32 %v611_v6, 0.0  ;;  %v679_v18 = vrot.slane %v4966_v51, 7 }
 0x17d   : > { %v768_v44 = vsel %vm754_vm0, %v6124_v53, %v6123_v50  ;;  %v747_v7 = vrot.slane %v4966_v51, 1  ;;  %v6125_v56 = vrot.slane %v4859_v60, 7  ;;  %v684_v53 = vrot.slane %v5005_v48, 7 }
 0x17e   : > { %v5037_v13 = vpack.c.bf16 %v767_v1, %v768_v44  ;;  %v682_v12 = vrot.slane %v5016_v19, 7  ;;  %v685_v37 = vrot.slane %v653_v24, 7  ;;  %v753_v30 = vrot.slane %v653_v24, 1 }
 0x17f   : > { %v698_v50 = vsel %vm688_vm1, %v6125_v56, %v677_v36  ;;  %v683_v57 = vrot.slane %v5033_v33, 7  ;;  %v6126_v6 = vmov %v6125_v56  ;;  %v6127_v1 = vrot.slane %v4859_v60, 1 }
 0x180   : > { %v699_v27 = vsel %vm688_vm1, %v675_v47, %v6126_v6  ;;  %v766_v56 = vsel %vm754_vm0, %v742_v39, %v743_v21  ;;  %v689_v41 = vsel %vm688_vm1, %v685_v37, 0.0  ;;  %v755_v40 = vsel %vm754_vm0, %v753_v30, 0.0 }
 0x181   : > { %v765_v44 = vsel %vm754_vm0, %v743_v21, %v6127_v1  ;;  %v5060_v32 = vpack.c.bf16 %v698_v50, %v699_v27  ;;  %v750_v47 = vrot.slane %v5016_v19, 1  ;;  %v6128_v6 = vmov 0.0  }
 0x182   : > { %v5062_v38 = vpack.c.bf16 %v765_v44, %v766_v56  ;;  %v5066_v54 = vpack.c.bf16 %v6128_v6, %v689_v41  ;;  %v696_v1 = vsel %vm688_vm1, %v678_v52, %v679_v18  ;;  %v697_v21 = vsel %vm688_vm1, %v677_v36, %v678_v52  ;;  %2916 = vmatmul.mubr.msk.bf16.gmra.mxu1 %vm4656_vm5, %v4883_v25 }
 0x183   : > { %v5075_v39 = vpack.c.bf16 %v696_v1, %v697_v21  ;;  %v6130_v27 = vrot.slane %v4895_v0, 1  ;;  %v6132_v44 = vrot.slane %v4859_v60, 1  ;;  %v694_v52 = vsel %vm688_vm1, %v680_v35, %v681_v4  ;;  %1587 = vmatprep.mubr.bf16.mxu1 %v4906_v11  ;;  %3000 = vmatmul.mubr.msk.bf16.gmra.mxu0 %vm4667_vm6, %v4885_v49 }
 0x184   : > { %6129 = vst [vmem:[#allocation29_spill] sm:$0xff] %v5066_v54  ;;  %v752_v36 = vrot.slane %v5005_v48, 1  ;;  %v751_v6 = vrot.slane %v5033_v33, 1  ;;  %v695_v21 = vsel %vm688_vm1, %v679_v18, %v680_v35  ;;  %3004 = vmatprep.mubr.msk.bf16.mxu0 %vm4656_vm5, %v4944_v34  ;;  %v762_v54 = vsel %vm754_vm0, %v746_v58, %v747_v7 }
 0x185   : > { %v763_v50 = vsel %vm754_vm0, %v6130_v27, %v746_v58  ;;  %v6131_v41 = vmov %v6130_v27  ;;  %v5102_v27 = vpack.c.bf16 %v694_v52, %v695_v21  ;;  %v693_v35 = vsel %vm688_vm1, %v681_v4, %v682_v12 }
 0x186   : > { %v764_v56 = vsel %vm754_vm0, %v6132_v44, %v6131_v41  ;;  %v6133_v41 = vrot.slane %v4939_v3, 1  ;;  %v759_v18 = vsel %vm754_vm0, %v749_v8, %v750_v47  ;;  %v690_v58 = vsel %vm688_vm1, %v684_v53, %v685_v37 }
 0x187   : > { %v5095_v1 = vpack.c.bf16 %v763_v50, %v764_v56  ;;  %v692_v50 = vsel %vm688_vm1, %v682_v12, %v683_v57  ;;  %v757_v12 = vsel %vm754_vm0, %v751_v6, %v752_v36  ;;  %v758_v4 = vsel %vm754_vm0, %v750_v47, %v751_v6 }
 0x188   : > { %v761_v44 = vsel %vm754_vm0, %v747_v7, %v6133_v41  ;;  %v6134_v52 = vmov %v6133_v41  ;;  %v5122_v41 = vpack.c.bf16 %v692_v50, %v693_v35  ;;  %v5143_v37 = vpack.c.bf16 %v653_v24, %v5005_v48 }
 0x189   : > { %v5112_v56 = vpack.c.bf16 %v761_v44, %v762_v54  ;;  %v760_v21 = vsel %vm754_vm0, %v6134_v52, %v749_v8  ;;  %v691_v54 = vsel %vm688_vm1, %v683_v57, %v684_v53  ;;  %v756_v8 = vsel %vm754_vm0, %v752_v36, %v753_v30 }
 0x18a   : > { %v5124_v11 = vpack.c.bf16 %v759_v18, %v760_v21  ;;  %v5130_v7 = vpack.c.bf16 %v690_v58, %v691_v54  ;;  %v5138_v44 = vpack.c.bf16 %v757_v12, %v758_v4  ;;  %v5140_v50 = vpack.c.bf16 %v755_v40, %v756_v8  ;;  %2920 = vmatmul.mubr.msk.bf16.gmra.mxu1 %vm4656_vm5, %v4944_v34  ;;  %v6145_v4 = vld [vmem:[#allocation26_spill] sm:$0xff]  ;;  %v6146_v8 = vld [vmem:[#allocation19_spill] sm:$0xff] }
 0x18b   : > { %v5147_v53 = vpack.c.bf16 %v4837_v46, %v4824_v28  ;;  %v5151_v57 = vpack.c.bf16 %v4923_v2, %v4931_v29  ;;  %v736_v47 = vrot.slane %v4824_v28, 1  ;;  %v735_v6 = vrot.slane %v4818_v22, 1  ;;  %v3327_v2 = vpop.f32.mrf.mxu1 }
 0x18c   : > { %v5160_v40 = vpack.c.bf16 %v4937_v63, %v4962_v59  ;;  %v670_v30 = vrot.slane %v4647_v17, 7  ;;  %v6135_v29 = vrot.slane %v4809_v26, 1  ;;  %v6136_v48 = vrot.slane %v4728_v10, 7 }
 0x18d   : > { %1595 = vmatprep.mubr.bf16.mxu1 %v5147_v53  ;;  %3008 = vmatmul.mubr.msk.bf16.gmra.mxu0 %vm4667_vm6, %v5151_v57  ;;  %v3328_v22 = vpop.f32.mrf.mxu1  ;;  %v773_v28 = vsel %vm754_vm0, %v735_v6, %v736_v47  ;;  %v6137_v36 = vrot.slane %v4837_v46, 7  ;;  %v5188_v18 = vpack.c.bf16 %v4728_v10, %v4647_v17  ;;  %v737_v52 = vrot.slane %v4837_v46, 1 }
 0x18e   : > { %3012 = vmatprep.mubr.msk.bf16.mxu0 %vm4656_vm5, %v5160_v40  ;;  %v774_v63 = vsel %vm754_vm0, %v6135_v29, %v735_v6  ;;  %v5176_v59 = vadd.f32 %v3328_v22, %v3327_v2  ;;  %v704_v24 = vsel %vm688_vm1, %v670_v30, %v6136_v48  ;;  %v6138_v10 = vrot.slane %v4647_v17, 1  ;;  %v4131_v6 = vld [vmem:[#allocation7 + $0x208] sm:$0xff]   ;;  %v6148_v2 = vld [vmem:[#allocation22_spill] sm:$0xff]  ;;  %v6149_v22 = vld [vmem:[#allocation25_spill] sm:$0xff] }
 0x18f   : > { %v705_v35 = vsel %vm688_vm1, %v6137_v36, %v670_v30  ;;  %v5190_v26 = vpack.c.bf16 %v773_v28, %v774_v63  ;;  %v772_v58 = vsel %vm754_vm0, %v736_v47, %v737_v52  ;;  %v5213_v54 = vpack.c.bf16 %v4691_v42, %v4645_v16  ;;  %v6147_v47 = vld [vmem:[#allocation20_spill] sm:$0xff]  ;;  %v4132_v30 = vld [vmem:[#allocation7 + $0x200] sm:$0xff]  }
 0x190   : > { %v5196_v21 = vpack.c.bf16 %v704_v24, %v705_v35  ;;  %v771_v46 = vsel %vm754_vm0, %v737_v52, %v6138_v10  ;;  %v5243_v16 = vpack.c.bf16 %v4895_v0, %v4859_v60  ;;  %v5257_v17 = vpack.c.bf16 %v4966_v51, %v4948_v62  ;;  %v4126_v51 = vld [vmem:[#allocation7 + $0x230] sm:$0xff]   ;;  %v6150_v28 = vld [vmem:[#allocation27_spill] sm:$0xff]  ;;  %v6151_v29 = vld [vmem:[#allocation24_spill] sm:$0xff] }
 0x191   : > { %v5215_v12 = vpack.c.bf16 %v771_v46, %v772_v58  ;;  %v5271_v42 = vpack.c.bf16 %v4964_v15, %v4939_v3  ;;  %v5285_v60 = vpack.c.bf16 %v5033_v33, %v5016_v19  ;;  %v6140_v0 = vld [vmem:[#allocation21_spill] sm:$0xff]  ;;  %v4128_v3 = vld [vmem:[#allocation7 + $0x220] sm:$0xff]   ;;  %v6144_v15 = vld [vmem:[#allocation18_spill] sm:$0xff] }
 0x192   : > { %2924 = vmatmul.mubr.msk.bf16.gmra.mxu1 %vm4656_vm5, %v5160_v40  ;;  %v6143_v62 = vld [vmem:[#allocation17_spill] sm:$0xff]  ;;  %v4129_v19 = vld [vmem:[#allocation7 + $0x218] sm:$0xff]   ;;  %v6152_v63 = vld [vmem:[#allocation28_spill] sm:$0xff] }
 0x193   : > { %1603 = vmatprep.mubr.bf16.mxu1 %v5188_v18  ;;  %v4130_v33 = vld [vmem:[#allocation7 + $0x210] sm:$0xff]   ;;  %v4133_v58 = vld [vmem:[#allocation8 + $0x38] sm:$0xff]  }
 0x194   : > { %3903 = vmatprep.subr.bf16.mxu0 %v4133_v58 }
 0x195   : > { %3016 = vmatmul.mubr.msk.bf16.gmra.mxu0 %vm4667_vm6, %v5190_v26 }
 0x196   : > { %3020 = vmatprep.mubr.msk.bf16.mxu0 %vm4656_vm5, %v5196_v21 }
 0x19a   : > { %2928 = vmatmul.mubr.msk.bf16.gmra.mxu1 %vm4656_vm5, %v5196_v21 }
 0x19b   : > { %1611 = vmatprep.mubr.bf16.mxu1 %v5213_v54 }
 0x19d   : > { %3024 = vmatmul.mubr.msk.bf16.gmra.mxu0 %vm4667_vm6, %v5215_v12 }
 0x19e   : > { %3028 = vmatprep.mubr.msk.bf16.mxu0 %vm4656_vm5, %v4977_v5 }
 0x1a2   : > { %2932 = vmatmul.mubr.msk.bf16.gmra.mxu1 %vm4656_vm5, %v4977_v5 }
 0x1a3   : > { %1619 = vmatprep.mubr.bf16.mxu1 %v5229_v55 }
 0x1a5   : > { %3032 = vmatmul.mubr.msk.bf16.gmra.mxu0 %vm4667_vm6, %v4993_v45 }
 0x1a6   : > { %3036 = vmatprep.mubr.msk.bf16.mxu0 %vm4656_vm5, %v5007_v61 }
 0x1aa   : > { %2936 = vmatmul.mubr.msk.bf16.gmra.mxu1 %vm4656_vm5, %v5007_v61 }
 0x1ab   : > { %1627 = vmatprep.mubr.bf16.mxu1 %v5243_v16 }
 0x1ad   : > { %3040 = vmatmul.mubr.msk.bf16.gmra.mxu0 %vm4667_vm6, %v5037_v13 }
 0x1ae   : > { %3044 = vmatprep.mubr.msk.bf16.mxu0 %vm4656_vm5, %v5060_v32 }
 0x1b2   : > { %2940 = vmatmul.mubr.msk.bf16.gmra.mxu1 %vm4656_vm5, %v5060_v32 }
 0x1b3   : > { %1635 = vmatprep.mubr.bf16.mxu1 %v5257_v17 }
 0x1b5   : > { %3048 = vmatmul.mubr.msk.bf16.gmra.mxu0 %vm4667_vm6, %v5062_v38 }
 0x1b6   : > { %3052 = vmatprep.mubr.msk.bf16.mxu0 %vm4656_vm5, %v5075_v39 }
 0x1ba   : > { %2944 = vmatmul.mubr.msk.bf16.gmra.mxu1 %vm4656_vm5, %v5075_v39 }
 0x1bb   : > { %1643 = vmatprep.mubr.bf16.mxu1 %v5271_v42 }
 0x1bd   : > { %3056 = vmatmul.mubr.msk.bf16.gmra.mxu0 %vm4667_vm6, %v5095_v1 }
 0x1be   : > { %3060 = vmatprep.mubr.msk.bf16.mxu0 %vm4656_vm5, %v5102_v27 }
 0x1c2   : > { %2948 = vmatmul.mubr.msk.bf16.gmra.mxu1 %vm4656_vm5, %v5102_v27 }
 0x1c3   : > { %1651 = vmatprep.mubr.bf16.mxu1 %v5285_v60 }
 0x1c5   : > { %3064 = vmatmul.mubr.msk.bf16.gmra.mxu0 %vm4667_vm6, %v5112_v56 }
 0x1c6   : > { %3068 = vmatprep.mubr.msk.bf16.mxu0 %vm4656_vm5, %v5122_v41 }
 0x1ca   : > { %2952 = vmatmul.mubr.msk.bf16.gmra.mxu1 %vm4656_vm5, %v5122_v41 }
 0x1cb   : > { %3084 = vmatprep.mubr.msk.bf16.mxu1 %vm4667_vm6, %v4741_v20  ;;  %v4127_v20 = vld [vmem:[#allocation7 + $0x228] sm:$0xff]  }
 0x1cd   : > { %3072 = vmatmul.mubr.msk.bf16.gmra.mxu0 %vm4667_vm6, %v5124_v11 }
 0x1ce   : > { %3076 = vmatprep.mubr.msk.bf16.mxu0 %vm4656_vm5, %v5130_v7 }
 0x1d2   : > { %1854 = vmatmul.mubr.bf16.vlgmr.msra.gmra.mxu1 %v4633_v9  ;;  %v6142_v9 = vld [vmem:[#allocation23_spill] sm:$0xff] }
 0x1d3   : > { %3856 = vmatpush3.bf16.msra.mxu1 %v6139_v43  ;;  %3088 = vmatprep.mubr.msk.bf16.mxu1 %vm4667_vm6, %v6140_v0 }
 0x1d4   : > { %3857 = vmatprep.subr.bf16.mxu1 %v4126_v51 }
 0x1d5   : > { %3080 = vmatmul.mubr.msk.bf16.gmra.mxu0 %vm4667_vm6, %v5138_v44 }
 0x1d6   : > { %2014 = vmatprep.mubr.bf16.mxu0 %v6141_v14 }
 0x1d7   : > { %3858 = vmatpush3.bf16.msra.mxu1 %v4126_v51 }
 0x1d8   : > { %3859 = vmatprep.subr.bf16.mxu1 %v4127_v20 }
 0x1da   : > { %1862 = vmatmul.mubr.bf16.gmra.mxu1 %v6141_v14 }
 0x1db   : > { %3092 = vmatprep.mubr.msk.bf16.mxu1 %vm4667_vm6, %v6142_v9  ;;  %3860 = vmatpush3.bf16.msra.mxu1 %v4127_v20 }
 0x1dc   : > { %3861 = vmatprep.subr.bf16.mxu1 %v4128_v3 }
 0x1dd   : > { %3148 = vmatmul.mubr.msk.bf16.vlgmr.msra.gmra.mxu0 %vm4656_vm5, %v6143_v62 }
 0x1de   : > { %2022 = vmatprep.mubr.bf16.mxu0 %v6144_v15  ;;  %3904 = vmatpush3.bf16.msra.mxu0 %v4133_v58 }
 0x1df   : > { %3862 = vmatpush3.bf16.msra.mxu1 %v4128_v3 }
 0x1e0   : > { %3863 = vmatprep.subr.bf16.mxu1 %v4129_v19 }
 0x1e2   : > { %1870 = vmatmul.mubr.bf16.gmra.mxu1 %v6144_v15 }
 0x1e3   : > { %3096 = vmatprep.mubr.msk.bf16.mxu1 %vm4667_vm6, %v6145_v4  ;;  %3864 = vmatpush3.bf16.msra.mxu1 %v4129_v19 }
 0x1e4   : > { %3865 = vmatprep.subr.bf16.mxu1 %v4130_v33 }
 0x1e5   : > { %3152 = vmatmul.mubr.msk.bf16.gmra.mxu0 %vm4656_vm5, %v6146_v8 }
 0x1e6   : > { %2030 = vmatprep.mubr.bf16.mxu0 %v6147_v47 }
 0x1e7   : > { %3866 = vmatpush3.bf16.msra.mxu1 %v4130_v33 }
 0x1e8   : > { %3867 = vmatprep.subr.bf16.mxu1 %v4131_v6 }
 0x1ea   : > { %1878 = vmatmul.mubr.bf16.gmra.mxu1 %v6147_v47 }
 0x1eb   : > { %3100 = vmatprep.mubr.msk.bf16.mxu1 %vm4667_vm6, %v4885_v49  ;;  %3868 = vmatpush3.bf16.msra.mxu1 %v4131_v6 }
 0x1ec   : > { %3869 = vmatprep.subr.bf16.mxu1 %v4132_v30 }
 0x1ed   : > { %3156 = vmatmul.mubr.msk.bf16.gmra.mxu0 %vm4656_vm5, %v6148_v2 }
 0x1ee   : > { %2038 = vmatprep.mubr.bf16.mxu0 %v6149_v22 }
 0x1ef   : > { %3870 = vmatpush3.bf16.msra.mxu1 %v4132_v30 }
 0x1f2   : > { %1886 = vmatmul.mubr.bf16.gmra.mxu1 %v6149_v22 }
 0x1f3   : > { %3104 = vmatprep.mubr.msk.bf16.mxu1 %vm4667_vm6, %v5151_v57 }
 0x1f5   : > { %3160 = vmatmul.mubr.msk.bf16.gmra.mxu0 %vm4656_vm5, %v6150_v28 }
 0x1f6   : > { %2046 = vmatprep.mubr.bf16.mxu0 %v6151_v29 }
 0x1fa   : > { %1894 = vmatmul.mubr.bf16.gmra.mxu1 %v6151_v29 }
 0x1fb   : > { %3108 = vmatprep.mubr.msk.bf16.mxu1 %vm4667_vm6, %v5190_v26 }
 0x1fd   : > { %3164 = vmatmul.mubr.msk.bf16.gmra.mxu0 %vm4656_vm5, %v4883_v25  ;;  %v3330_v25 = vpop.f32.mrf.mxu1 }
 0x1fe   : > { %2054 = vmatprep.mubr.bf16.mxu0 %v6152_v63 }
 0x202   : > { %1902 = vmatmul.mubr.bf16.gmra.mxu1 %v6152_v63 }
 0x203   : > { %3112 = vmatprep.mubr.msk.bf16.mxu1 %vm4667_vm6, %v5215_v12 }
 0x205   : > { %3168 = vmatmul.mubr.msk.bf16.gmra.mxu0 %vm4656_vm5, %v4944_v34  ;;  %v3331_v34 = vpop.f32.mrf.mxu1 }
 0x206   : > { %2062 = vmatprep.mubr.bf16.mxu0 %v5147_v53  ;;  %v3332_v52 = vadd.f32 %v3331_v34, %v3330_v25 }
 0x20a   : > { %1910 = vmatmul.mubr.bf16.gmra.mxu1 %v5147_v53 }
 0x20b   : > { %3116 = vmatprep.mubr.msk.bf16.mxu1 %vm4667_vm6, %v4993_v45 }
 0x20d   : > { %3172 = vmatmul.mubr.msk.bf16.gmra.mxu0 %vm4656_vm5, %v5160_v40  ;;  %v5386_v40 = vld [vmem:[%s6044_s4] ss:$0 sm:$0xff] }
 0x20e   : > { %2070 = vmatprep.mubr.bf16.mxu0 %v5188_v18 }
 0x212   : > { %1918 = vmatmul.mubr.bf16.gmra.mxu1 %v5188_v18  ;;  %v1534_v18 = vadd.f32 %v5176_v59, %v5386_v40 }
 0x213   : > { %3120 = vmatprep.mubr.msk.bf16.mxu1 %vm4667_vm6, %v5037_v13 }
 0x215   : > { %3176 = vmatmul.mubr.msk.bf16.gmra.mxu0 %vm4656_vm5, %v5196_v21 }
 0x216   : > { %2078 = vmatprep.mubr.bf16.mxu0 %v5213_v54 }
 0x21a   : > { %v3333_v53 = vpop.f32.mrf.mxu1  ;;  %1926 = vmatmul.mubr.bf16.gmra.mxu1 %v5213_v54 }
 0x21b   : > { %v3439_v48 = vpop.f32.mrf.mxu0  ;;  %3124 = vmatprep.mubr.msk.bf16.mxu1 %vm4667_vm6, %v5062_v38 }
 0x21c   : > { %v3334_v24 = vpop.f32.mrf.mxu1 }
 0x21d   : > { %3180 = vmatmul.mubr.msk.bf16.gmra.mxu0 %vm4656_vm5, %v4977_v5  ;;  %v3335_v36 = vadd.f32 %v3334_v24, %v3333_v53  ;;  %v3440_v35 = vpop.f32.mrf.mxu0  ;;  %v1537_v5 = vadd.f32 %v3332_v52, %v5386_v40  ;;  %v4134_v52 = vld [vmem:[#allocation8 + $0x30] sm:$0xff]  }
 0x21e   : > { %2086 = vmatprep.mubr.bf16.mxu0 %v5229_v55  ;;  %v3441_v21 = vadd.f32 %v3440_v35, %v3439_v48  ;;  %v3336_v10 = vpop.f32.mrf.mxu1  ;;  %3905 = vmatprep.subr.bf16.mxu0 %v4134_v52 }
 0x21f   : > { %v3442_v46 = vpop.f32.mrf.mxu0  ;;  %v1542_v8 = vadd.f32 %v3335_v36, %v5386_v40  ;;  %3906 = vmatpush3.bf16.msra.mxu0 %v4134_v52 }
 0x220   : > { %v5397_v54 = vadd.f32 %v3441_v21, %v1534_v18  ;;  %v3337_v51 = vpop.f32.mrf.mxu1 }
 0x221   : > { %v3338_v43 = vadd.f32 %v3337_v51, %v3336_v10  ;;  %v3443_v14 = vpop.f32.mrf.mxu0 }
 0x222   : > { %v3444_v20 = vadd.f32 %v3443_v14, %v3442_v46  ;;  %v3339_v3 = vpop.f32.mrf.mxu1  ;;  %1934 = vmatmul.mubr.bf16.gmra.mxu1 %v5229_v55 }
 0x223   : > { %v3445_v62 = vpop.f32.mrf.mxu0  ;;  %3128 = vmatprep.mubr.msk.bf16.mxu1 %vm4667_vm6, %v5095_v1  ;;  %v1545_v29 = vadd.f32 %v3338_v43, %v5386_v40 }
 0x224   : > { %v5407_v59 = vadd.f32 %v3444_v20, %v1537_v5  ;;  %v3340_v15 = vpop.f32.mrf.mxu1 }
 0x225   : > { %3184 = vmatmul.mubr.msk.bf16.gmra.mxu0 %vm4656_vm5, %v5007_v61  ;;  %v3341_v19 = vadd.f32 %v3340_v15, %v3339_v3  ;;  %v3446_v33 = vpop.f32.mrf.mxu0 }
 0x226   : > { %2094 = vmatprep.mubr.bf16.mxu0 %v5243_v16  ;;  %v3447_v55 = vadd.f32 %v3446_v33, %v3445_v62  ;;  %v3342_v47 = vpop.f32.mrf.mxu1 }
 0x227   : > { %v3448_v6 = vpop.f32.mrf.mxu0  ;;  %v1550_v36 = vadd.f32 %v3341_v19, %v5386_v40 }
 0x228   : > { %v5411_v30 = vadd.f32 %v3447_v55, %v1542_v8  ;;  %v3343_v2 = vpop.f32.mrf.mxu1 }
 0x229   : > { %v3344_v22 = vadd.f32 %v3343_v2, %v3342_v47  ;;  %v3449_v28 = vpop.f32.mrf.mxu0 }
 0x22a   : > { %v3450_v61 = vadd.f32 %v3449_v28, %v3448_v6  ;;  %v3345_v63 = vpop.f32.mrf.mxu1  ;;  %1942 = vmatmul.mubr.bf16.gmra.mxu1 %v5243_v16 }
 0x22b   : > { %v3451_v25 = vpop.f32.mrf.mxu0  ;;  %3132 = vmatprep.mubr.msk.bf16.mxu1 %vm4667_vm6, %v5112_v56 }
 0x22c   : > { %v5421_v34 = vadd.f32 %v3450_v61, %v1545_v29  ;;  %v3346_v53 = vpop.f32.mrf.mxu1 }
 0x22d   : > { %3188 = vmatmul.mubr.msk.bf16.gmra.mxu0 %vm4656_vm5, %v5060_v32  ;;  %v3347_v48 = vadd.f32 %v3346_v53, %v3345_v63  ;;  %v3452_v24 = vpop.f32.mrf.mxu0  ;;  %v1553_v32 = vadd.f32 %v3344_v22, %v5386_v40 }
 0x22e   : > { %2102 = vmatprep.mubr.bf16.mxu0 %v5257_v17  ;;  %v3453_v35 = vadd.f32 %v3452_v24, %v3451_v25  ;;  %v3348_v16 = vpop.f32.mrf.mxu1 }
 0x22f   : > { %v3454_v18 = vpop.f32.mrf.mxu0  ;;  %v1558_v15 = vadd.f32 %v3347_v48, %v5386_v40 }
 0x230   : > { %v5425_v21 = vadd.f32 %v3453_v35, %v1550_v36  ;;  %v3349_v10 = vpop.f32.mrf.mxu1  ;;  %v4135_v36 = vld [vmem:[#allocation8 + $0x28] sm:$0xff]  }
 0x231   : > { %v3350_v46 = vadd.f32 %v3349_v10, %v3348_v16  ;;  %v3455_v58 = vpop.f32.mrf.mxu0  ;;  %3907 = vmatprep.subr.bf16.mxu0 %v4135_v36 }
 0x232   : > { %v3456_v51 = vadd.f32 %v3455_v58, %v3454_v18  ;;  %v3351_v43 = vpop.f32.mrf.mxu1  ;;  %1950 = vmatmul.mubr.bf16.gmra.mxu1 %v5257_v17  ;;  %3908 = vmatpush3.bf16.msra.mxu0 %v4135_v36 }
 0x233   : > { %v3457_v14 = vpop.f32.mrf.mxu0  ;;  %3136 = vmatprep.mubr.msk.bf16.mxu1 %vm4667_vm6, %v5124_v11  ;;  %v1561_v2 = vadd.f32 %v3350_v46, %v5386_v40 }
 0x234   : > { %v5435_v5 = vadd.f32 %v3456_v51, %v1553_v32  ;;  %v3352_v20 = vpop.f32.mrf.mxu1 }
 0x235   : > { %3192 = vmatmul.mubr.msk.bf16.gmra.mxu0 %vm4656_vm5, %v5075_v39  ;;  %v3353_v3 = vadd.f32 %v3352_v20, %v3351_v43  ;;  %v3458_v62 = vpop.f32.mrf.mxu0 }
 0x236   : > { %2110 = vmatprep.mubr.bf16.mxu0 %v5271_v42  ;;  %v3459_v17 = vadd.f32 %v3458_v62, %v3457_v14  ;;  %v3354_v19 = vpop.f32.mrf.mxu1 }
 0x237   : > { %v3460_v33 = vpop.f32.mrf.mxu0  ;;  %v1566_v53 = vadd.f32 %v3353_v3, %v5386_v40 }
 0x238   : > { %v5439_v8 = vadd.f32 %v3459_v17, %v1558_v15  ;;  %v3355_v55 = vpop.f32.mrf.mxu1 }
 0x239   : > { %v3356_v47 = vadd.f32 %v3355_v55, %v3354_v19  ;;  %v3461_v6 = vpop.f32.mrf.mxu0 }
 0x23a   : > { %v3462_v39 = vadd.f32 %v3461_v6, %v3460_v33  ;;  %v3357_v22 = vpop.f32.mrf.mxu1  ;;  %1958 = vmatmul.mubr.bf16.gmra.mxu1 %v5271_v42 }
 0x23b   : > { %v3463_v28 = vpop.f32.mrf.mxu0  ;;  %3140 = vmatprep.mubr.msk.bf16.mxu1 %vm4667_vm6, %v5138_v44 }
 0x23c   : > { %v5449_v29 = vadd.f32 %v3462_v39, %v1561_v2  ;;  %v3358_v61 = vpop.f32.mrf.mxu1 }
 0x23d   : > { %3196 = vmatmul.mubr.msk.bf16.gmra.mxu0 %vm4656_vm5, %v5102_v27  ;;  %v3359_v63 = vadd.f32 %v3358_v61, %v3357_v22  ;;  %v3464_v25 = vpop.f32.mrf.mxu0  ;;  %v1569_v27 = vadd.f32 %v3356_v47, %v5386_v40  ;;  %v6153_v22 = vmov 0.0|0.0  }
 0x23e   : > { %2118 = vmatprep.mubr.bf16.mxu0 %v5285_v60  ;;  %v3465_v48 = vadd.f32 %v3464_v25, %v3463_v28  ;;  %v3360_v42 = vpop.f32.mrf.mxu1 }
 0x23f   : > { %v3466_v24 = vpop.f32.mrf.mxu0  ;;  %v1574_v20 = vadd.f32 %v3359_v63, %v5386_v40 }
 0x240   : > { %v5453_v35 = vadd.f32 %v3465_v48, %v1566_v53  ;;  %v3361_v16 = vpop.f32.mrf.mxu1  ;;  %v4136_v48 = vld [vmem:[#allocation8 + $0x20] sm:$0xff]  }
 0x241   : > { %v3362_v18 = vadd.f32 %v3361_v16, %v3360_v42  ;;  %v3467_v52 = vpop.f32.mrf.mxu0  ;;  %3909 = vmatprep.subr.bf16.mxu0 %v4136_v48 }
 0x242   : > { %v3468_v10 = vadd.f32 %v3467_v52, %v3466_v24  ;;  %v3363_v46 = vpop.f32.mrf.mxu1  ;;  %1966 = vmatmul.mubr.bf16.gmra.mxu1 %v5285_v60  ;;  %3910 = vmatpush3.bf16.msra.mxu0 %v4136_v48 }
 0x243   : > { %v3469_v58 = vpop.f32.mrf.mxu0  ;;  %3144 = vmatprep.mubr.msk.bf16.mxu1 %vm4667_vm6, %v5140_v50  ;;  %v1577_v55 = vadd.f32 %v3362_v18, %v5386_v40 }
 0x244   : > { %v5463_v32 = vadd.f32 %v3468_v10, %v1569_v27  ;;  %v3364_v51 = vpop.f32.mrf.mxu1  ;;  %v6154_v27 = vld [vmem:[#allocation29_spill] sm:$0xff] }
 0x245   : > { %3200 = vmatmul.mubr.msk.bf16.gmra.mxu0 %vm4656_vm5, %v5122_v41  ;;  %v3365_v43 = vadd.f32 %v3364_v51, %v3363_v46  ;;  %v3470_v14 = vpop.f32.mrf.mxu0 }
 0x246   : > { %2126 = vmatprep.mubr.bf16.mxu0 %v5143_v37  ;;  %v3471_v60 = vadd.f32 %v3470_v14, %v3469_v58  ;;  %v3366_v3 = vpop.f32.mrf.mxu1 }
 0x247   : > { %v3472_v62 = vpop.f32.mrf.mxu0  ;;  %v1582_v63 = vadd.f32 %v3365_v43, %v5386_v40 }
 0x248   : > { %v5467_v15 = vadd.f32 %v3471_v60, %v1574_v20  ;;  %v3367_v17 = vpop.f32.mrf.mxu1 }
 0x249   : > { %v3368_v19 = vadd.f32 %v3367_v17, %v3366_v3  ;;  %v3473_v33 = vpop.f32.mrf.mxu0 }
 0x24a   : > { %v3474_v41 = vadd.f32 %v3473_v33, %v3472_v62  ;;  %v3369_v47 = vpop.f32.mrf.mxu1  ;;  %1974 = vmatmul.mubr.bf16.gmra.mxu1 %v5143_v37 }
 0x24b   : > { %3871 = vmatprep.mubr.msk.bf16.mxu1 %vm4667_vm6, %v6140_v0  ;;  %v1585_v0 = vadd.f32 %v3368_v19, %v5386_v40 }
 0x24c   : > { %v5477_v2 = vadd.f32 %v3474_v41, %v1577_v55  ;;  %v3370_v39 = vpop.f32.mrf.mxu1 }
 0x24d   : > { %v3475_v6 = vpop.f32.mrf.mxu0  ;;  %3204 = vmatmul.mubr.msk.bf16.gmra.mxu0 %vm4656_vm5, %v5130_v7  ;;  %v3371_v28 = vadd.f32 %v3370_v39, %v3369_v47 }
 0x24e   : > { %2134 = vmatprep.mubr.bf16.mxu0 %v6153_v22  ;;  %v3372_v37 = vpop.f32.mrf.mxu1 }
 0x24f   : > { %v3476_v61 = vpop.f32.mrf.mxu0  ;;  %v1590_v43 = vadd.f32 %v3371_v28, %v5386_v40 }
 0x250   : > { %v3477_v25 = vadd.f32 %v3476_v61, %v3475_v6  ;;  %v3373_v7 = vpop.f32.mrf.mxu1 }
 0x251   : > { %v3478_v53 = vpop.f32.mrf.mxu0  ;;  %v3374_v24 = vadd.f32 %v3373_v7, %v3372_v37 }
 0x252   : > { %v5481_v42 = vadd.f32 %v3477_v25, %v1582_v63  ;;  %v3375_v18 = vpop.f32.mrf.mxu1  ;;  %3872 = vmatmul.mubr.msk.bf16.vlgmr.msra.gmra.mxu1 %vm4667_vm6, %v6142_v9  ;;  %v4137_v25 = vld [vmem:[#allocation8 + $0x18] sm:$0xff]  }
 0x253   : > { %v3479_v36 = vpop.f32.mrf.mxu0  ;;  %3875 = vmatprep.mubr.msk.bf16.mxu1 %vm4667_vm6, %v6145_v4  ;;  %v1593_v17 = vadd.f32 %v3374_v24, %v5386_v40  ;;  %3911 = vmatprep.subr.bf16.mxu0 %v4137_v25 }
 0x254   : > { %v3480_v16 = vadd.f32 %v3479_v36, %v3478_v53  ;;  %v3376_v46 = vpop.f32.mrf.mxu1  ;;  %3912 = vmatpush3.bf16.msra.mxu0 %v4137_v25 }
 0x255   : > { %v3481_v52 = vpop.f32.mrf.mxu0  ;;  %3208 = vmatmul.mubr.msk.bf16.gmra.mxu0 %vm4656_vm5, %v6154_v27  ;;  %v3377_v58 = vadd.f32 %v3376_v46, %v3375_v18 }
 0x256   : > { %v5493_v10 = vadd.f32 %v3480_v16, %v1585_v0  ;;  %v3378_v20 = vpop.f32.mrf.mxu1 }
 0x257   : > { %v3482_v51 = vpop.f32.mrf.mxu0  ;;  %v1598_v39 = vadd.f32 %v3377_v58, %v5386_v40 }
 0x258   : > { %v3483_v14 = vadd.f32 %v3482_v51, %v3481_v52  ;;  %v3379_v3 = vpop.f32.mrf.mxu1 }
 0x259   : > { %v3484_v9 = vpop.f32.mrf.mxu0  ;;  %v3380_v62 = vadd.f32 %v3379_v3, %v3378_v20 }
 0x25a   : > { %v5496_v60 = vadd.f32 %v3483_v14, %v1590_v43  ;;  %v3381_v33 = vpop.f32.mrf.mxu1  ;;  %3876 = vmatmul.mubr.msk.bf16.gmra.mxu1 %vm4667_vm6, %v4885_v49 }
 0x25b   : > { %v3485_v23 = vpop.f32.mrf.mxu0  ;;  %3879 = vmatprep.mubr.msk.bf16.mxu1 %vm4667_vm6, %v5151_v57  ;;  %v1601_v7 = vadd.f32 %v3380_v62, %v5386_v40 }
 0x25c   : > { %v3486_v19 = vadd.f32 %v3485_v23, %v3484_v9  ;;  %v3382_v41 = vpop.f32.mrf.mxu1 }
 0x25d   : > { %v3487_v4 = vpop.f32.mrf.mxu0  ;;  %v3383_v47 = vadd.f32 %v3382_v41, %v3381_v33 }
 0x25e   : > { %v5505_v55 = vadd.f32 %v3486_v19, %v1593_v17  ;;  %v3384_v61 = vpop.f32.mrf.mxu1 }
 0x25f   : > { %v3488_v6 = vpop.f32.mrf.mxu0  ;;  %v1606_v27 = vadd.f32 %v3383_v47, %v5386_v40 }
 0x260   : > { %v3489_v28 = vadd.f32 %v3488_v6, %v3487_v4  ;;  %v3385_v53 = vpop.f32.mrf.mxu1 }
 0x261   : > { %v3490_v63 = vpop.f32.mrf.mxu0  ;;  %v3386_v49 = vadd.f32 %v3385_v53, %v3384_v61 }
 0x262   : > { %v5508_v37 = vadd.f32 %v3489_v28, %v1598_v39  ;;  %v3387_v24 = vpop.f32.mrf.mxu1  ;;  %3880 = vmatmul.mubr.msk.bf16.gmra.mxu1 %vm4667_vm6, %v5190_v26  ;;  %v4138_v39 = vld [vmem:[#allocation8 + $0x10] sm:$0xff]  }
 0x263   : > { %v3491_v48 = vpop.f32.mrf.mxu0  ;;  %3883 = vmatprep.mubr.msk.bf16.mxu1 %vm4667_vm6, %v5215_v12  ;;  %v1609_v9 = vadd.f32 %v3386_v49, %v5386_v40  ;;  %3913 = vmatprep.subr.bf16.mxu0 %v4138_v39 }
 0x264   : > { %v3492_v57 = vadd.f32 %v3491_v48, %v3490_v63  ;;  %v3388_v16 = vpop.f32.mrf.mxu1  ;;  %3914 = vmatpush3.bf16.msra.mxu0 %v4138_v39 }
 0x265   : > { %v3493_v36 = vpop.f32.mrf.mxu0  ;;  %v3389_v18 = vadd.f32 %v3388_v16, %v3387_v24 }
 0x266   : > { %v5517_v0 = vadd.f32 %v3492_v57, %v1601_v7  ;;  %v3390_v58 = vpop.f32.mrf.mxu1 }
 0x267   : > { %v3494_v52 = vpop.f32.mrf.mxu0  ;;  %v1614_v4 = vadd.f32 %v3389_v18, %v5386_v40 }
 0x268   : > { %v3495_v46 = vadd.f32 %v3494_v52, %v3493_v36  ;;  %v3391_v14 = vpop.f32.mrf.mxu1 }
 0x269   : > { %v3496_v51 = vpop.f32.mrf.mxu0  ;;  %v3392_v26 = vadd.f32 %v3391_v14, %v3390_v58 }
 0x26a   : > { %v5520_v43 = vadd.f32 %v3495_v46, %v1606_v27  ;;  %v3393_v62 = vpop.f32.mrf.mxu1  ;;  %3884 = vmatmul.mubr.msk.bf16.gmra.mxu1 %vm4667_vm6, %v4993_v45 }
 0x26b   : > { %v3497_v20 = vpop.f32.mrf.mxu0  ;;  %3887 = vmatprep.mubr.msk.bf16.mxu1 %vm4667_vm6, %v5037_v13  ;;  %v1617_v25 = vadd.f32 %v3392_v26, %v5386_v40 }
 0x26c   : > { %v3498_v3 = vadd.f32 %v3497_v20, %v3496_v51  ;;  %v3394_v17 = vpop.f32.mrf.mxu1 }
 0x26d   : > { %v3499_v12 = vpop.f32.mrf.mxu0  ;;  %v3395_v19 = vadd.f32 %v3394_v17, %v3393_v62 }
 0x26e   : > { %v5529_v23 = vadd.f32 %v3498_v3, %v1609_v9  ;;  %v3396_v47 = vpop.f32.mrf.mxu1 }
 0x26f   : > { %v3500_v33 = vpop.f32.mrf.mxu0  ;;  %v1622_v36 = vadd.f32 %v3395_v19, %v5386_v40 }
 0x270   : > { %v3501_v41 = vadd.f32 %v3500_v33, %v3499_v12  ;;  %v3397_v61 = vpop.f32.mrf.mxu1 }
 0x271   : > { %v3502_v6 = vpop.f32.mrf.mxu0  ;;  %v3398_v45 = vadd.f32 %v3397_v61, %v3396_v47 }
 0x272   : > { %v5532_v28 = vadd.f32 %v3501_v41, %v1614_v4  ;;  %v3399_v53 = vpop.f32.mrf.mxu1  ;;  %3888 = vmatmul.mubr.msk.bf16.gmra.mxu1 %vm4667_vm6, %v5062_v38  ;;  %v4139_v4 = vld [vmem:[#allocation8 + $0x8] sm:$0xff]  }
 0x273   : > { %v3503_v63 = vpop.f32.mrf.mxu0  ;;  %3891 = vmatprep.mubr.msk.bf16.mxu1 %vm4667_vm6, %v5095_v1  ;;  %v1625_v51 = vadd.f32 %v3398_v45, %v5386_v40  ;;  %3915 = vmatprep.subr.bf16.mxu0 %v4139_v4 }
 0x274   : > { %v3504_v13 = vadd.f32 %v3503_v63, %v3502_v6  ;;  %v3400_v7 = vpop.f32.mrf.mxu1  ;;  %3916 = vmatpush3.bf16.msra.mxu0 %v4139_v4 }
 0x275   : > { %v3505_v49 = vpop.f32.mrf.mxu0  ;;  %v3401_v57 = vadd.f32 %v3400_v7, %v3399_v53 }
 0x276   : > { %v5541_v48 = vadd.f32 %v3504_v13, %v1617_v25  ;;  %v3402_v18 = vpop.f32.mrf.mxu1 }
 0x277   : > { %v3506_v24 = vpop.f32.mrf.mxu0  ;;  %v1630_v12 = vadd.f32 %v3401_v57, %v5386_v40 }
 0x278   : > { %v3507_v16 = vadd.f32 %v3506_v24, %v3505_v49  ;;  %v3403_v46 = vpop.f32.mrf.mxu1 }
 0x279   : > { %v3508_v52 = vpop.f32.mrf.mxu0  ;;  %v3404_v38 = vadd.f32 %v3403_v46, %v3402_v18 }
 0x27a   : > { %v5544_v27 = vadd.f32 %v3507_v16, %v1622_v36  ;;  %v3405_v26 = vpop.f32.mrf.mxu1  ;;  %3892 = vmatmul.mubr.msk.bf16.gmra.mxu1 %vm4667_vm6, %v5112_v56 }
 0x27b   : > { %v3509_v58 = vpop.f32.mrf.mxu0  ;;  %3895 = vmatprep.mubr.msk.bf16.mxu1 %vm4667_vm6, %v5124_v11  ;;  %v1633_v39 = vadd.f32 %v3404_v38, %v5386_v40 }
 0x27c   : > { %v3510_v14 = vadd.f32 %v3509_v58, %v3508_v52  ;;  %v3406_v9 = vpop.f32.mrf.mxu1 }
 0x27d   : > { %v3511_v1 = vpop.f32.mrf.mxu0  ;;  %v3407_v3 = vadd.f32 %v3406_v9, %v3405_v26 }
 0x27e   : > { %v5553_v20 = vadd.f32 %v3510_v14, %v1625_v51  ;;  %v3408_v19 = vpop.f32.mrf.mxu1 }
 0x27f   : > { %v3512_v62 = vpop.f32.mrf.mxu0  ;;  %v1638_v49 = vadd.f32 %v3407_v3, %v5386_v40 }
 0x280   : > { %v3513_v17 = vadd.f32 %v3512_v62, %v3511_v1  ;;  %v3409_v47 = vpop.f32.mrf.mxu1  ;;  %v4140_v62 = vld [vmem:[#allocation8] sm:$0xff]  }
 0x281   : > { %v3514_v33 = vpop.f32.mrf.mxu0  ;;  %v3410_v56 = vadd.f32 %v3409_v47, %v3408_v19  ;;  %3917 = vmatprep.subr.bf16.mxu0 %v4140_v62 }
 0x282   : > { %v5556_v41 = vadd.f32 %v3513_v17, %v1630_v12  ;;  %v3411_v61 = vpop.f32.mrf.mxu1  ;;  %3896 = vmatmul.mubr.msk.bf16.gmra.mxu1 %vm4667_vm6, %v5138_v44  ;;  %3918 = vmatpush3.bf16.msra.mxu0 %v4140_v62 }
 0x283   : > { %v3515_v6 = vpop.f32.mrf.mxu0  ;;  %3899 = vmatprep.mubr.msk.bf16.mxu1 %vm4667_vm6, %v5140_v50  ;;  %v1641_v52 = vadd.f32 %v3410_v56, %v5386_v40 }
 0x284   : > { %v3516_v11 = vadd.f32 %v3515_v6, %v3514_v33  ;;  %v3412_v25 = vpop.f32.mrf.mxu1 }
 0x285   : > { %v3517_v45 = vpop.f32.mrf.mxu0  ;;  %v3413_v13 = vadd.f32 %v3412_v25, %v3411_v61 }
 0x286   : > { %v5565_v63 = vadd.f32 %v3516_v11, %v1633_v39  ;;  %v3414_v57 = vpop.f32.mrf.mxu1 }
 0x287   : > { %v3518_v53 = vpop.f32.mrf.mxu0  ;;  %v1646_v26 = vadd.f32 %v3413_v13, %v5386_v40 }
 0x288   : > { %v3519_v7 = vadd.f32 %v3518_v53, %v3517_v45  ;;  %v3415_v16 = vpop.f32.mrf.mxu1 }
 0x289   : > { %v3520_v24 = vpop.f32.mrf.mxu0  ;;  %v3416_v44 = vadd.f32 %v3415_v16, %v3414_v57 }
 0x28a   : > { %v5568_v36 = vadd.f32 %v3519_v7, %v1638_v49  ;;  %v3417_v31 = vpop.f32.mrf.mxu1  ;;  %3900 = vmatmul.mubr.bf16.gmra.mxu1 %v6153_v22 }
 0x28b   : > { %v3521_v18 = vpop.f32.mrf.mxu0  ;;  %v1649_v22 = vadd.f32 %v3416_v44, %v5386_v40 }
 0x28c   : > { %v3522_v46 = vadd.f32 %v3521_v18, %v3520_v24  ;;  %v3418_v58 = vpop.f32.mrf.mxu1 }
 0x28d   : > { %v3523_v50 = vpop.f32.mrf.mxu0  ;;  %v3419_v51 = vadd.f32 %v3418_v58, %v3417_v31 }
 0x28e   : > { %v5572_v38 = vadd.f32 %v3522_v46, %v1641_v52  ;;  %v3420_v9 = vpop.f32.mrf.mxu1 }
 0x28f   : > { %v3524_v14 = vpop.f32.mrf.mxu0  ;;  %v1654_v45 = vadd.f32 %v3419_v51, %v5386_v40 }
 0x290   : > { %v3525_v1 = vadd.f32 %v3524_v14, %v3523_v50  ;;  %v3421_v17 = vpop.f32.mrf.mxu1 }
 0x291   : > { %v3526_v3 = vpop.f32.mrf.mxu0  ;;  %v3422_v19 = vadd.f32 %v3421_v17, %v3420_v9 }
 0x292   : > { %v5575_v12 = vadd.f32 %v3525_v1, %v1646_v26  ;;  %v3551_v47 = vpop.f32.mrf.mxu1 }
 0x293   : > { %v3527_v33 = vpop.f32.mrf.mxu0  ;;  %v1657_v44 = vadd.f32 %v3422_v19, %v5386_v40 }
 0x294   : > { %v3528_v4 = vadd.f32 %v3527_v33, %v3526_v3  ;;  %v3552_v39 = vpop.f32.mrf.mxu1 }
 0x295   : > { %v3529_v56 = vpop.f32.mrf.mxu0  ;;  %v3553_v11 = vadd.f32 %v3552_v39, %v3551_v47 }
 0x296   : > { %v5578_v6 = vadd.f32 %v3528_v4, %v1649_v22  ;;  %v3554_v13 = vpop.f32.mrf.mxu1 }
 0x297   : > { %v3530_v61 = vpop.f32.mrf.mxu0  ;;  %v1856_v53 = vadd.f32 %v3553_v11, %v5397_v54 }
 0x298   : > { %v3531_v25 = vadd.f32 %v3530_v61, %v3529_v56  ;;  %v3555_v57 = vpop.f32.mrf.mxu1 }
 0x299   : > { %v3532_v49 = vpop.f32.mrf.mxu0  ;;  %v3556_v24 = vadd.f32 %v3555_v57, %v3554_v13 }
 0x29a   : > { %v5582_v7 = vadd.f32 %v3531_v25, %v1654_v45  ;;  %v3557_v52 = vpop.f32.mrf.mxu1 }
 0x29b   : > { %v3533_v16 = vpop.f32.mrf.mxu0  ;;  %v1859_v46 = vadd.f32 %v3556_v24, %v5407_v59 }
 0x29c   : > { %v3534_v18 = vadd.f32 %v3533_v16, %v3532_v49  ;;  %v3558_v58 = vpop.f32.mrf.mxu1 }
 0x29d   : > { %v3663_v31 = vpop.f32.mrf.mxu0  ;;  %v3559_v51 = vadd.f32 %v3558_v58, %v3557_v52 }
 0x29e   : > { %v5586_v50 = vadd.f32 %v3534_v18, %v1657_v44  ;;  %v3560_v54 = vpop.f32.mrf.mxu1 }
 0x29f   : > { %v3664_v14 = vpop.f32.mrf.mxu0  ;;  %v5589_v1 = vadd.f32 %v3559_v51, %v5411_v30 }
 0x2a0   : > { %6155 = vst [vmem:[#allocation15_spill] sm:$0xff] %v5586_v50  ;;  %v3665_v26 = vadd.f32 %v3664_v14, %v3663_v31  ;;  %v3561_v3 = vpop.f32.mrf.mxu1 }
 0x2a1   : > { %v3666_v9 = vpop.f32.mrf.mxu0  ;;  %v3562_v40 = vadd.f32 %v3561_v3, %v3560_v54 }
 0x2a2   : > { %v5591_v62 = vadd.f32 %v3665_v26, %v1856_v53  ;;  %v3563_v33 = vpop.f32.mrf.mxu1 }
 0x2a3   : > { %v3667_v17 = vpop.f32.mrf.mxu0  ;;  %v5594_v59 = vadd.f32 %v3562_v40, %v5421_v34 }
 0x2a4   : > { %v3668_v19 = vadd.f32 %v3667_v17, %v3666_v9  ;;  %v3564_v4 = vpop.f32.mrf.mxu1 }
 0x2a5   : > { %v5596_v22 = vpop.f32.mrf.mxu0  ;;  %v3565_v56 = vadd.f32 %v3564_v4, %v3563_v33 }
 0x2a6   : > { %v5598_v47 = vadd.f32 %v3668_v19, %v1859_v46  ;;  %v3566_v30 = vpop.f32.mrf.mxu1 }
 0x2a7   : > { %v5600_v39 = vpop.f32.mrf.mxu0  ;;  %v5603_v11 = vadd.f32 %v3565_v56, %v5425_v21 }
 0x2a8   : > { %v3567_v45 = vpop.f32.mrf.mxu1 }
 0x2a9   : > { %v5605_v61 = vpop.f32.mrf.mxu0  ;;  %v3568_v25 = vadd.f32 %v3567_v45, %v3566_v30 }
 0x2aa   : > { %v3569_v34 = vpop.f32.mrf.mxu1 }
 0x2ab   : > { %v5607_v13 = vpop.f32.mrf.mxu0  ;;  %v5610_v53 = vadd.f32 %v3568_v25, %v5435_v5 }
 0x2ac   : > { %v3570_v57 = vpop.f32.mrf.mxu1 }
 0x2ad   : > { %v5612_v49 = vpop.f32.mrf.mxu0  ;;  %v3571_v24 = vadd.f32 %v3570_v57, %v3569_v34 }
 0x2ae   : > { %v3572_v44 = vpop.f32.mrf.mxu1 }
 0x2af   : > { %v5614_v16 = vpop.f32.mrf.mxu0  ;;  %v5617_v21 = vadd.f32 %v3571_v24, %v5439_v8 }
 0x2b0   : > { %v3573_v52 = vpop.f32.mrf.mxu1 }
 0x2b1   : > { %v5619_v18 = vpop.f32.mrf.mxu0  ;;  %v3574_v46 = vadd.f32 %v3573_v52, %v3572_v44 }
 0x2b2   : > { %v3575_v58 = vpop.f32.mrf.mxu1 }
 0x2b3   : > { %v5621_v31 = vpop.f32.mrf.mxu0  ;;  %v5624_v5 = vadd.f32 %v3574_v46, %v5449_v29 }
 0x2b4   : > { %v3576_v14 = vpop.f32.mrf.mxu1 }
 0x2b5   : > { %v5626_v51 = vpop.f32.mrf.mxu0  ;;  %v3577_v26 = vadd.f32 %v3576_v14, %v3575_v58 }
 0x2b6   : > { %v3578_v9 = vpop.f32.mrf.mxu1 }
 0x2b7   : > { %v5628_v54 = vpop.f32.mrf.mxu0  ;;  %v5631_v8 = vadd.f32 %v3577_v26, %v5453_v35 }
 0x2b8   : > { %v3579_v40 = vpop.f32.mrf.mxu1 }
 0x2b9   : > { %v5633_v3 = vpop.f32.mrf.mxu0  ;;  %v3580_v17 = vadd.f32 %v3579_v40, %v3578_v9 }
 0x2ba   : > { %v3581_v33 = vpop.f32.mrf.mxu1 }
 0x2bb   : > { %v5635_v19 = vpop.f32.mrf.mxu0  ;;  %v5638_v29 = vadd.f32 %v3580_v17, %v5463_v32 }
 0x2bc   : > { %v3582_v56 = vpop.f32.mrf.mxu1 }
 0x2bd   : > { %v5640_v4 = vpop.f32.mrf.mxu0  ;;  %v3583_v30 = vadd.f32 %v3582_v56, %v3581_v33 }
 0x2be   : > { %v3584_v25 = vpop.f32.mrf.mxu1 }
 0x2bf   : > { %v5642_v45 = vpop.f32.mrf.mxu0  ;;  %v5645_v35 = vadd.f32 %v3583_v30, %v5467_v15 }
 0x2c0   : > { %v3585_v57 = vpop.f32.mrf.mxu1 }
 0x2c1   : > { %v5647_v34 = vpop.f32.mrf.mxu0  ;;  %v3586_v24 = vadd.f32 %v3585_v57, %v3584_v25 }
 0x2c2   : > { %v3587_v52 = vpop.f32.mrf.mxu1 }
 0x2c3   : > { %v5649_v44 = vpop.f32.mrf.mxu0  ;;  %v5652_v32 = vadd.f32 %v3586_v24, %v5477_v2 }
 0x2c4   : > { %v3588_v58 = vpop.f32.mrf.mxu1 }
 0x2c5   : > { %v5654_v46 = vpop.f32.mrf.mxu0  ;;  %v3589_v14 = vadd.f32 %v3588_v58, %v3587_v52 }
 0x2c6   : > { %v3590_v9 = vpop.f32.mrf.mxu1 }
 0x2c7   : > { %v5656_v26 = vpop.f32.mrf.mxu0  ;;  %v5659_v15 = vadd.f32 %v3589_v14, %v5481_v42 }
 0x2c8   : > { %v3591_v17 = vpop.f32.mrf.mxu1 }
 0x2c9   : > { %6156 = vst [vmem:[#allocation21_spill] sm:$0xff] %v5659_v15  ;;  %v5661_v40 = vpop.f32.mrf.mxu0  ;;  %v3592_v33 = vadd.f32 %v3591_v17, %v3590_v9 }
 0x2ca   : > { %v3593_v30 = vpop.f32.mrf.mxu1 }
 0x2cb   : > { %v5663_v56 = vpop.f32.mrf.mxu0  ;;  %v5666_v2 = vadd.f32 %v3592_v33, %v5493_v10 }
 0x2cc   : > { %v3594_v57 = vpop.f32.mrf.mxu1 }
 0x2cd   : > { %6157 = vst [vmem:[#allocation16_spill] sm:$0xff] %v5666_v2  ;;  %v5668_v25 = vpop.f32.mrf.mxu0  ;;  %v3595_v24 = vadd.f32 %v3594_v57, %v3593_v30 }
 0x2ce   : > { %v3596_v58 = vpop.f32.mrf.mxu1 }
 0x2cf   : > { %v5670_v52 = vpop.f32.mrf.mxu0  ;;  %v5673_v42 = vadd.f32 %v3595_v24, %v5496_v60 }
 0x2d0   : > { %6158 = vst [vmem:[#allocation23_spill] sm:$0xff] %v5670_v52  ;;  %v3597_v50 = vpop.f32.mrf.mxu1 }
 0x2d1   : > { %6159 = vst [vmem:[#allocation17_spill] sm:$0xff] %v5673_v42  ;;  %v5675_v14 = vpop.f32.mrf.mxu0  ;;  %v3598_v9 = vadd.f32 %v3597_v50, %v3596_v58 }
 0x2d2   : > { %6160 = vst [vmem:[#allocation18_spill] sm:$0xff] %v5675_v14  ;;  %v3599_v15 = vpop.f32.mrf.mxu1 }
 0x2d3   : > { %v5677_v17 = vpop.f32.mrf.mxu0  ;;  %v5680_v10 = vadd.f32 %v3598_v9, %v5505_v55 }
 0x2d4   : > { %6161 = vst [vmem:[#allocation26_spill] sm:$0xff] %v5677_v17  ;;  %v3600_v2 = vpop.f32.mrf.mxu1 }
 0x2d5   : > { %6162 = vst [vmem:[#allocation19_spill] sm:$0xff] %v5680_v10  ;;  %v5682_v33 = vpop.f32.mrf.mxu0  ;;  %v3601_v30 = vadd.f32 %v3600_v2, %v3599_v15 }
 0x2d6   : > { %v3602_v52 = vpop.f32.mrf.mxu1 }
 0x2d7   : > { %v5684_v57 = vpop.f32.mrf.mxu0  ;;  %v5687_v60 = vadd.f32 %v3601_v30, %v5508_v37 }
 0x2d8   : > { %v3603_v42 = vpop.f32.mrf.mxu1 }
 0x2d9   : > { %6163 = vst [vmem:[#allocation20_spill] sm:$0xff] %v5687_v60  ;;  %v5689_v24 = vpop.f32.mrf.mxu0  ;;  %v3604_v50 = vadd.f32 %v3603_v42, %v3602_v52 }
 0x2da   : > { %v3605_v17 = vpop.f32.mrf.mxu1 }
 0x2db   : > { %v5691_v58 = vpop.f32.mrf.mxu0  ;;  %v5694_v55 = vadd.f32 %v3604_v50, %v5517_v0 }
 0x2dc   : > { %6164 = vst [vmem:[#allocation22_spill] sm:$0xff] %v5691_v58  ;;  %v3606_v10 = vpop.f32.mrf.mxu1 }
 0x2dd   : > { %6165 = vst [vmem:[#allocation25_spill] sm:$0xff] %v5694_v55  ;;  %v5696_v9 = vpop.f32.mrf.mxu0  ;;  %v3607_v15 = vadd.f32 %v3606_v10, %v3605_v17 }
 0x2de   : > { %v3608_v14 = vpop.f32.mrf.mxu1 }
 0x2df   : > { %v5698_v2 = vpop.f32.mrf.mxu0  ;;  %v5701_v37 = vadd.f32 %v3607_v15, %v5520_v43 }
 0x2e0   : > { %6166 = vst [vmem:[#allocation27_spill] sm:$0xff] %v5698_v2  ;;  %v3609_v60 = vpop.f32.mrf.mxu1 }
 0x2e1   : > { %6167 = vst [vmem:[#allocation24_spill] sm:$0xff] %v5701_v37  ;;  %v5703_v30 = vpop.f32.mrf.mxu0  ;;  %v3610_v52 = vadd.f32 %v3609_v60, %v3608_v14 }
 0x2e2   : > { %6168 = vst [vmem:[#allocation28_spill] sm:$0xff] %v5703_v30  ;;  %v3611_v58 = vpop.f32.mrf.mxu1 }
 0x2e3   : > { %v5705_v42 = vpop.f32.mrf.mxu0  ;;  %v5708_v0 = vadd.f32 %v3610_v52, %v5529_v23 }
 0x2e4   : > { %6169 = vst [vmem:[#allocation29_spill] sm:$0xff] %v5705_v42  ;;  %v3612_v55 = vpop.f32.mrf.mxu1 }
 0x2e5   : > { %6170 = vst [vmem:[#allocation30_spill] sm:$0xff] %v5708_v0  ;;  %v5710_v50 = vpop.f32.mrf.mxu0  ;;  %v3613_v17 = vadd.f32 %v3612_v55, %v3611_v58 }
 0x2e6   : > { %v3614_v2 = vpop.f32.mrf.mxu1 }
 0x2e7   : > { %v5712_v10 = vpop.f32.mrf.mxu0  ;;  %v5715_v43 = vadd.f32 %v3613_v17, %v5532_v28 }
 0x2e8   : > { %v3615_v37 = vpop.f32.mrf.mxu1 }
 0x2e9   : > { %6171 = vst [vmem:[#allocation31_spill] sm:$0xff] %v5715_v43  ;;  %v5717_v15 = vpop.f32.mrf.mxu0  ;;  %v3616_v14 = vadd.f32 %v3615_v37, %v3614_v2 }
 0x2ea   : > { %6172 = vst [vmem:[#allocation32_spill] sm:$0xff] %v5717_v15  ;;  %v3617_v42 = vpop.f32.mrf.mxu1 }
 0x2eb   : > { %v5719_v60 = vpop.f32.mrf.mxu0  ;;  %v5722_v23 = vadd.f32 %v3616_v14, %v5541_v48 }
 0x2ec   : > { %v3618_v0 = vpop.f32.mrf.mxu1 }
 0x2ed   : > { %6173 = vst [vmem:[#allocation33_spill] sm:$0xff] %v5722_v23  ;;  %v5724_v52 = vpop.f32.mrf.mxu0  ;;  %v3619_v58 = vadd.f32 %v3618_v0, %v3617_v42 }
 0x2ee   : > { %6174 = vst [vmem:[#allocation34_spill] sm:$0xff] %v5724_v52  ;;  %v3620_v30 = vpop.f32.mrf.mxu1 }
 0x2ef   : > { %v5726_v55 = vpop.f32.mrf.mxu0  ;;  %v5729_v28 = vadd.f32 %v3619_v58, %v5544_v27 }
 0x2f0   : > { %6175 = vst [vmem:[#allocation35_spill] sm:$0xff] %v5726_v55  ;;  %v3621_v17 = vpop.f32.mrf.mxu1 }
 0x2f1   : > { %6176 = vst [vmem:[#allocation36_spill] sm:$0xff] %v5729_v28  ;;  %v3622_v43 = vadd.f32 %v3621_v17, %v3620_v30  ;;  %v5731_v15 = vpop.f32.mrf.mxu0 }
 0x2f2   : > { %v3623_v2 = vpop.f32.mrf.mxu1 }
 0x2f3   : > { %v5734_v37 = vadd.f32 %v3622_v43, %v5553_v20  ;;  %v5736_v23 = vpop.f32.mrf.mxu0 }
 0x2f4   : > { %v3624_v48 = vpop.f32.mrf.mxu1 }
 0x2f5   : > { %6177 = vst [vmem:[#allocation37_spill] sm:$0xff] %v5734_v37  ;;  %v3625_v14 = vadd.f32 %v3624_v48, %v3623_v2  ;;  %v5741_v27 = vpop.f32.mrf.mxu0 }
 0x2f6   : > { %v3626_v52 = vpop.f32.mrf.mxu1 }
 0x2f7   : > { %v5739_v42 = vadd.f32 %v3625_v14, %v5556_v41  ;;  %v5746_v20 = vpop.f32.mrf.mxu0 }
 0x2f8   : > { %v3627_v0 = vpop.f32.mrf.mxu1 }
 0x2f9   : > { %6178 = vst [vmem:[#allocation38_spill] sm:$0xff] %v5739_v42  ;;  %v3628_v55 = vadd.f32 %v3627_v0, %v3626_v52  ;;  %v5751_v41 = vpop.f32.mrf.mxu0 }
 0x2fa   : > { %v3629_v58 = vpop.f32.mrf.mxu1 }
 0x2fb   : > { %v5744_v30 = vadd.f32 %v3628_v55, %v5565_v63  ;;  %v5756_v63 = vpop.f32.mrf.mxu0 }
 0x2fc   : > { %v3630_v17 = vpop.f32.mrf.mxu1 }
 0x2fd   : > { %6179 = vst [vmem:[#allocation39_spill] sm:$0xff] %v5744_v30  ;;  %v3631_v28 = vadd.f32 %v3630_v17, %v3629_v58 }
 0x2fe   : > { %v3632_v43 = vpop.f32.mrf.mxu1 }
 0x2ff   : > { %v5749_v2 = vadd.f32 %v3631_v28, %v5568_v36  ;;  %v5761_v36 = vpop.f32.mrf.mxu0 }
 0x300   : > { %v3633_v48 = vpop.f32.mrf.mxu1 }
 0x301   : > { %6180 = vst [vmem:[#allocation40_spill] sm:$0xff] %v5749_v2  ;;  %v3634_v37 = vadd.f32 %v3633_v48, %v3632_v43 }
 0x302   : > { %v3635_v14 = vpop.f32.mrf.mxu1 }
 0x303   : > { %v5754_v52 = vadd.f32 %v3634_v37, %v5572_v38  ;;  %v5766_v38 = vpop.f32.mrf.mxu0 }
 0x304   : > { %v3636_v0 = vpop.f32.mrf.mxu1 }
 0x305   : > { %v3637_v42 = vadd.f32 %v3636_v0, %v3635_v14  ;;  %v3671_v14 = vadd.f32 %v5600_v39, %v5596_v22  ;;  %v3674_v0 = vadd.f32 %v5607_v13, %v5605_v61  ;;  %v3677_v61 = vadd.f32 %v5614_v16, %v5612_v49 }
 0x306   : > { %v3638_v55 = vpop.f32.mrf.mxu1 }
 0x307   : > { %v5759_v58 = vadd.f32 %v3637_v42, %v5575_v12 }
 0x308   : > { %v3639_v17 = vpop.f32.mrf.mxu1 }
 0x309   : > { %v3640_v30 = vadd.f32 %v3639_v17, %v3638_v55  ;;  %v5779_v55 = vpop.f32.mrf.mxu0 }
 0x30a   : > { %v3641_v28 = vpop.f32.mrf.mxu1 }
 0x30b   : > { %v5764_v43 = vadd.f32 %v3640_v30, %v5578_v6  ;;  %v2025_v30 = vadd.f32 %v3671_v14, %v5589_v1  ;;  %v3686_v1 = vadd.f32 %v5635_v19, %v5633_v3  ;;  %v2033_v3 = vadd.f32 %v3677_v61, %v5603_v11 }
 0x30c   : > { %v3642_v48 = vpop.f32.mrf.mxu1  ;;  %v3698_v11 = vadd.f32 %v5663_v56, %v5661_v40 }
 0x30d   : > { %6181 = vst [vmem:[#allocation41_spill] sm:$0xff] %v5764_v43  ;;  %v3643_v2 = vadd.f32 %v3642_v48, %v3641_v28  ;;  %v2028_v48 = vadd.f32 %v3674_v0, %v5594_v59  ;;  %v5783_v43 = vpop.f32.mrf.mxu0  ;;  %v3680_v0 = vadd.f32 %v5621_v31, %v5619_v18  ;;  %v2044_v19 = vadd.f32 %v3686_v1, %v5624_v5 }
 0x30e   : > { %v5768_v37 = vpop.f32.mrf.mxu1  ;;  %v3695_v18 = vadd.f32 %v5656_v26, %v5654_v46  ;;  %v3692_v1 = vadd.f32 %v5649_v44, %v5647_v34  ;;  %v2060_v40 = vadd.f32 %v3698_v11, %v5652_v32  ;;  %v3707_v34 = vadd.f32 %v5684_v57, %v5682_v33 }
 0x30f   : > { %v5773_v12 = vadd.f32 %v3643_v2, %v5582_v7  ;;  %v3683_v7 = vadd.f32 %v5628_v54, %v5626_v51 }
 0x310   : > { %v5775_v42 = vpop.f32.mrf.mxu1 }
 0x312   : > { %v3873_v6 = vpop.f32.mrf.mxu1 }
 0x313   : > { %v2186_v28 = vadd.f32 %v3873_v6, %v2025_v30  ;;  %v5795_v30 = vpop.f32.mrf.mxu0 }
 0x314   : > { %v2177_v17 = vpop.f32.mrf.mxu1 }
 0x315   : > { %v2178_v39 = vadd.f32 %v2177_v17, %v5591_v62  ;;  %v2306_v14 = vmax.f32 %v2186_v28, 0.0  ;;  %v5800_v28 = vpop.f32.mrf.mxu0 }
 0x316   : > { %v3874_v22 = vpop.f32.mrf.mxu1 }
 0x317   : > { %v2189_v2 = vadd.f32 %v3874_v22, %v2028_v48  ;;  %v2304_v54 = vmax.f32 %v2178_v39, 0.0  ;;  %v2041_v48 = vadd.f32 %v3683_v7, %v5617_v21  ;;  %v2036_v39 = vadd.f32 %v3680_v0, %v5610_v53  ;;  %v5811_v46 = vpop.f32.mrf.mxu0 }
 0x318   : > { %v2180_v13 = vpop.f32.mrf.mxu1  ;;  %v3689_v21 = vadd.f32 %v5642_v45, %v5640_v4 }
 0x319   : > { %v2307_v6 = vmax.f32 %v2189_v2, 0.0  ;;  %v2181_v59 = vadd.f32 %v2180_v13, %v5598_v47  ;;  %v5816_v56 = vpop.f32.mrf.mxu0 }
 0x31a   : > { %v3877_v51 = vpop.f32.mrf.mxu1 }
 0x31b   : > { %v2337_v62 = vpack.c.bf16 %v2307_v6, %v2306_v14  ;;  %v2305_v17 = vmax.f32 %v2181_v59, 0.0  ;;  %v2202_v22 = vadd.f32 %v3877_v51, %v2041_v48  ;;  %v2057_v59 = vadd.f32 %v3695_v18, %v5645_v35  ;;  %v6182_v35 = vld [vmem:[#allocation23_spill] sm:$0xff]  ;;  %v5827_v33 = vpop.f32.mrf.mxu0 }
 0x31c   : > { %v2193_v49 = vpop.f32.mrf.mxu1  ;;  %v2049_v51 = vadd.f32 %v3689_v21, %v5631_v8  ;;  %v3701_v48 = vadd.f32 %v6182_v35, %v5668_v25  ;;  %v6183_v8 = vld [vmem:[#allocation22_spill] sm:$0xff]  ;;  %v6193_v35 = vld [vmem:[#allocation29_spill] sm:$0xff] }
 0x31d   : > { %v2336_v16 = vpack.c.bf16 %v2305_v17, %v2304_v54  ;;  %v2194_v31 = vadd.f32 %v2193_v49, %v2033_v3  ;;  %v2310_v5 = vmax.f32 %v2202_v22, 0.0  ;;  %v2052_v17 = vadd.f32 %v3692_v1, %v5638_v29  ;;  %v5832_v1 = vpop.f32.mrf.mxu0 }
 0x31e   : > { %v3878_v47 = vpop.f32.mrf.mxu1 }
 0x31f   : > { %v2205_v2 = vadd.f32 %v3878_v47, %v2044_v19  ;;  %3919 = vmatprep.mubr.bf16.mxu0 %v2336_v16  ;;  %v2308_v14 = vmax.f32 %v2194_v31, 0.0  ;;  %v3710_v16 = vadd.f32 %v6183_v8, %v5689_v24  ;;  %v6184_v19 = vld [vmem:[#allocation18_spill] sm:$0xff]  ;;  %v6188_v24 = vld [vmem:[#allocation19_spill] sm:$0xff] }
 0x320   : > { %v2196_v7 = vpop.f32.mrf.mxu1  ;;  %3920 = vmatmul.mubr.bf16.vlgmr.msra.gmra.mxu0 %v2337_v62  ;;  %v6185_v47 = vld [vmem:[#allocation26_spill] sm:$0xff] }
 0x321   : > { %v2311_v61 = vmax.f32 %v2205_v2, 0.0  ;;  %v2197_v13 = vadd.f32 %v2196_v7, %v2036_v39  ;;  %v3704_v18 = vadd.f32 %v6185_v47, %v6184_v19  ;;  %v6186_v39 = vld [vmem:[#allocation17_spill] sm:$0xff]  ;;  %v6195_v47 = vld [vmem:[#allocation20_spill] sm:$0xff] }
 0x322   : > { %v3881_v26 = vpop.f32.mrf.mxu1  ;;  %v2073_v21 = vadd.f32 %v3707_v34, %v6186_v39 }
 0x323   : > { %v2339_v6 = vpack.c.bf16 %v2311_v61, %v2310_v5  ;;  %v2309_v53 = vmax.f32 %v2197_v13, 0.0  ;;  %v2218_v0 = vadd.f32 %v3881_v26, %v2057_v59  ;;  %v6187_v5 = vld [vmem:[#allocation21_spill] sm:$0xff]  ;;  %v2076_v13 = vadd.f32 %v3710_v16, %v6188_v24  ;;  %v6189_v59 = vld [vmem:[#allocation16_spill] sm:$0xff] }
 0x324   : > { %v2209_v4 = vpop.f32.mrf.mxu1  ;;  %v2065_v61 = vadd.f32 %v3701_v48, %v6187_v5  ;;  %v6199_v5 = vld [vmem:[#allocation35_spill] sm:$0xff] }
 0x325   : > { %v2338_v45 = vpack.c.bf16 %v2309_v53, %v2308_v14  ;;  %v2210_v44 = vadd.f32 %v2209_v4, %v2049_v51  ;;  %v2314_v32 = vmax.f32 %v2218_v0, 0.0  ;;  %v3719_v14 = vadd.f32 %v5712_v10, %v5710_v50  ;;  %v5843_v50 = vpop.f32.mrf.mxu0 }
 0x326   : > { %v3882_v54 = vpop.f32.mrf.mxu1  ;;  %v2068_v4 = vadd.f32 %v3704_v18, %v6189_v59 }
 0x327   : > { %v2221_v62 = vadd.f32 %v3882_v54, %v2060_v40  ;;  %3923 = vmatprep.mubr.bf16.mxu0 %v2338_v45  ;;  %v2312_v31 = vmax.f32 %v2210_v44, 0.0  ;;  %v6190_v45 = vld [vmem:[#allocation27_spill] sm:$0xff]  ;;  %v6191_v40 = vld [vmem:[#allocation32_spill] sm:$0xff] }
 0x328   : > { %v2212_v49 = vpop.f32.mrf.mxu1  ;;  %3924 = vmatmul.mubr.bf16.gmra.mxu0 %v2339_v6  ;;  %v3713_v0 = vadd.f32 %v6190_v45, %v5696_v9  ;;  %v3722_v54 = vadd.f32 %v5719_v60, %v6191_v40  ;;  %v6196_v60 = vld [vmem:[#allocation30_spill] sm:$0xff] }
 0x329   : > { %v2315_v22 = vmax.f32 %v2221_v62, 0.0  ;;  %v2213_v3 = vadd.f32 %v2212_v49, %v2052_v17  ;;  %v6192_v17 = vld [vmem:[#allocation28_spill] sm:$0xff] }
 0x32a   : > { %v3885_v57 = vpop.f32.mrf.mxu1  ;;  %v3716_v48 = vadd.f32 %v6193_v35, %v6192_v17  ;;  %v2081_v18 = vadd.f32 %v3713_v0, %v6195_v47  ;;  %v6200_v0 = vld [vmem:[#allocation36_spill] sm:$0xff]  ;;  %v6202_v17 = vld [vmem:[#allocation37_spill] sm:$0xff] }
 0x32b   : > { %v2341_v2 = vpack.c.bf16 %v2315_v22, %v2314_v32  ;;  %v2313_v29 = vmax.f32 %v2213_v3, 0.0  ;;  %v2234_v11 = vadd.f32 %v3885_v57, %v2073_v21  ;;  %v6194_v32 = vld [vmem:[#allocation24_spill] sm:$0xff]  ;;  %v2092_v57 = vadd.f32 %v3722_v54, %v6196_v60 }
 0x32c   : > { %v2225_v25 = vpop.f32.mrf.mxu1  ;;  %v2089_v22 = vadd.f32 %v3719_v14, %v6194_v32  ;;  %v3746_v32 = vadd.f32 %v5816_v56, %v5811_v46  ;;  %v3646_v56 = vadd.f32 %v5775_v42, %v5768_v37 }
 0x32d   : > { %v2340_v7 = vpack.c.bf16 %v2313_v29, %v2312_v31  ;;  %v2226_v6 = vadd.f32 %v2225_v25, %v2065_v61  ;;  %v2318_v34 = vmax.f32 %v2234_v11, 0.0  ;;  %v5848_v31 = vpop.f32.mrf.mxu0  ;;  %v3731_v29 = vadd.f32 %v5746_v20, %v5741_v27  ;;  %v6197_v25 = vld [vmem:[#allocation25_spill] sm:$0xff]  ;;  %v6198_v11 = vld [vmem:[#allocation34_spill] sm:$0xff] }
 0x32e   : > { %v3886_v26 = vpop.f32.mrf.mxu1  ;;  %v3725_v61 = vadd.f32 %v6199_v5, %v6198_v11  ;;  %v2124_v46 = vadd.f32 %v3746_v32, %v5754_v52  ;;  %v6206_v5 = vld [vmem:[#allocation39_spill] sm:$0xff]  ;;  %v3752_v37 = vadd.f32 %v5848_v31, %v5843_v50 }
 0x32f   : > { %v2237_v53 = vadd.f32 %v3886_v26, %v2076_v13  ;;  %3927 = vmatprep.mubr.bf16.mxu0 %v2340_v7  ;;  %v2316_v49 = vmax.f32 %v2226_v6, 0.0  ;;  %v2084_v7 = vadd.f32 %v3716_v48, %v6197_v25  ;;  %v3734_v13 = vadd.f32 %v5756_v63, %v5751_v41  ;;  %v3753_v27 = vpop.f32.mrf.mxu0 }
 0x330   : > { %v2228_v51 = vpop.f32.mrf.mxu1  ;;  %3928 = vmatmul.mubr.bf16.gmra.mxu0 %v2341_v2  ;;  %v3743_v48 = vadd.f32 %v5800_v28, %v5795_v30 }
 0x331   : > { %v2319_v44 = vmax.f32 %v2237_v53, 0.0  ;;  %v2229_v62 = vadd.f32 %v2228_v51, %v2068_v4  ;;  %v3728_v53 = vadd.f32 %v5736_v23, %v5731_v15  ;;  %v2105_v51 = vadd.f32 %v3731_v29, %v6200_v0  ;;  %v3754_v63 = vpop.f32.mrf.mxu0 }
 0x332   : > { %v3889_v10 = vpop.f32.mrf.mxu1  ;;  %v2108_v41 = vadd.f32 %v3734_v13, %v6202_v17 }
 0x333   : > { %v2343_v8 = vpack.c.bf16 %v2319_v44, %v2318_v34  ;;  %v2317_v16 = vmax.f32 %v2229_v62, 0.0  ;;  %v2250_v19 = vadd.f32 %v3889_v10, %v2089_v22  ;;  %v6201_v44 = vld [vmem:[#allocation31_spill] sm:$0xff]  ;;  %v6203_v10 = vld [vmem:[#allocation33_spill] sm:$0xff]  ;;  %v3756_v30 = vpop.f32.mrf.mxu0 }
 0x334   : > { %v2241_v9 = vpop.f32.mrf.mxu1  ;;  %v2097_v62 = vadd.f32 %v3725_v61, %v6201_v44 }
 0x335   : > { %v2342_v3 = vpack.c.bf16 %v2317_v16, %v2316_v49  ;;  %v2242_v39 = vadd.f32 %v2241_v9, %v2081_v18  ;;  %v2322_v26 = vmax.f32 %v2250_v19, 0.0  ;;  %v2100_v49 = vadd.f32 %v3728_v53, %v6203_v10  ;;  %v3757_v25 = vpop.f32.mrf.mxu0  ;;  %v6207_v53 = vld [vmem:[#allocation15_spill] sm:$0xff] }
 0x336   : > { %v3890_v2 = vpop.f32.mrf.mxu1  ;;  %v3740_v19 = vadd.f32 %v5783_v43, %v5779_v55  ;;  %v3755_v43 = vadd.f32 %v3754_v63, %v3753_v27 }
 0x337   : > { %v2253_v21 = vadd.f32 %v3890_v2, %v2092_v57  ;;  %3931 = vmatprep.mubr.bf16.mxu0 %v2342_v3  ;;  %v2320_v59 = vmax.f32 %v2242_v39, 0.0  ;;  %v6204_v57 = vld [vmem:[#allocation40_spill] sm:$0xff]  ;;  %v6205_v39 = vld [vmem:[#allocation38_spill] sm:$0xff] }
 0x338   : > { %v2244_v24 = vpop.f32.mrf.mxu1  ;;  %3932 = vmatmul.mubr.bf16.gmra.mxu0 %v2343_v8  ;;  %v3737_v8 = vadd.f32 %v5766_v38, %v5761_v36  ;;  %v2121_v2 = vadd.f32 %v3743_v48, %v6204_v57  ;;  %v2116_v61 = vadd.f32 %v3740_v19, %v6206_v5 }
 0x339   : > { %v2323_v14 = vmax.f32 %v2253_v21, 0.0  ;;  %v2245_v6 = vadd.f32 %v2244_v24, %v2084_v7  ;;  %v3749_v24 = vadd.f32 %v5832_v1, %v5827_v33 }
 0x33a   : > { %v3893_v20 = vpop.f32.mrf.mxu1  ;;  %v2113_v21 = vadd.f32 %v3737_v8, %v6205_v39  ;;  %v4141_v8 = vld [vmem:[%s4548_s19 + $0x10] sm:$0xff] }
 0x33b   : > { %v2345_v4 = vpack.c.bf16 %v2323_v14, %v2322_v26  ;;  %v2321_v45 = vmax.f32 %v2245_v6, 0.0  ;;  %v2266_v34 = vadd.f32 %v3893_v20, %v2105_v51  ;;  %v3758_v26 = vadd.f32 %v3757_v25, %v3756_v30 }
 0x33c   : > { %v2257_v40 = vpop.f32.mrf.mxu1  ;;  %v1979_v20 = vadd.f32 %v3646_v56, %v6207_v53  ;;  %v2129_v1 = vadd.f32 %v3749_v24, %v5759_v58  ;;  %v5888_v58 = vld [vmem:[%s6046_s6] ss:$0 sm:$0xff]  ;;  %v4145_v56 = vld [vmem:[%s4548_s19 + $0x30] sm:$0xff] }
 0x33d   : > { %v2344_v54 = vpack.c.bf16 %v2321_v45, %v2320_v59  ;;  %v2258_v15 = vadd.f32 %v2257_v40, %v2097_v62  ;;  %v2326_v22 = vmax.f32 %v2266_v34, 0.0  ;;  %v2137_v45 = vadd.f32 %v3755_v43, %v5773_v12  ;;  %v6208_v62 = vld [vmem:[#allocation41_spill] sm:$0xff] }
 0x33e   : > { %v3894_v35 = vpop.f32.mrf.mxu1  ;;  %v2140_v40 = vadd.f32 %v3758_v26, %v1979_v20  ;;  %v2132_v17 = vadd.f32 %v3752_v37, %v6208_v62  ;;  %v4147_v26 = vld [vmem:[%s4548_s19 + $0x38] sm:$0xff]  ;;  %v4148_v20 = vld [vmem:[%s4548_s19 + $0x28] sm:$0xff] }
 0x33f   : > { %v2269_v23 = vadd.f32 %v3894_v35, %v2108_v41  ;;  %3935 = vmatprep.mubr.bf16.mxu0 %v2344_v54  ;;  %v2324_v47 = vmax.f32 %v2258_v15, 0.0  ;;  %v4151_v62 = vld [vmem:[%s4548_s19 + $0x58] sm:$0xff] }
 0x340   : > { %v2260_v16 = vpop.f32.mrf.mxu1  ;;  %3936 = vmatmul.mubr.bf16.gmra.mxu0 %v2345_v4 }
 0x341   : > { %v2327_v9 = vmax.f32 %v2269_v23, 0.0  ;;  %v2261_v3 = vadd.f32 %v2260_v16, %v2100_v49 }
 0x342   : > { %v3897_v28 = vpop.f32.mrf.mxu1 }
 0x343   : > { %v2347_v18 = vpack.c.bf16 %v2327_v9, %v2326_v22  ;;  %v2325_v60 = vmax.f32 %v2261_v3, 0.0  ;;  %v2282_v38 = vadd.f32 %v3897_v28, %v2121_v2  ;;  %v4142_v3 = vld [vmem:[%s4548_s19] sm:$0xff] }
 0x344   : > { %v2273_v29 = vpop.f32.mrf.mxu1 }
 0x345   : > { %v2346_v36 = vpack.c.bf16 %v2325_v60, %v2324_v47  ;;  %v2274_v55 = vadd.f32 %v2273_v29, %v2113_v21  ;;  %v2330_v14 = vmax.f32 %v2282_v38, 0.0 }
 0x346   : > { %v3898_v7 = vpop.f32.mrf.mxu1 }
 0x347   : > { %v2285_v11 = vadd.f32 %v3898_v7, %v2124_v46  ;;  %3939 = vmatprep.mubr.bf16.mxu0 %v2346_v36  ;;  %v2328_v27 = vmax.f32 %v2274_v55, 0.0  ;;  %v4144_v36 = vld [vmem:[%s4548_s19 + $0x8] sm:$0xff] }
 0x348   : > { %v2276_v13 = vpop.f32.mrf.mxu1  ;;  %3940 = vmatmul.mubr.bf16.gmra.mxu0 %v2347_v18  ;;  %v4143_v18 = vld [vmem:[%s4548_s19 + $0x18] sm:$0xff] }
 0x349   : > { %v2331_v6 = vmax.f32 %v2285_v11, 0.0  ;;  %v2277_v52 = vadd.f32 %v2276_v13, %v2116_v61  ;;  %v4146_v11 = vld [vmem:[%s4548_s19 + $0x20] sm:$0xff] }
 0x34a   : > { %v3901_v42 = vpop.f32.mrf.mxu1 }
 0x34b   : > { %v2349_v59 = vpack.c.bf16 %v2331_v6, %v2330_v14  ;;  %v2329_v4 = vmax.f32 %v2277_v52, 0.0  ;;  %v2298_v33 = vadd.f32 %v3901_v42, %v2137_v45 }
 0x34c   : > { %v2289_v0 = vpop.f32.mrf.mxu1 }
 0x34d   : > { %v2348_v51 = vpack.c.bf16 %v2329_v4, %v2328_v27  ;;  %v2290_v34 = vadd.f32 %v2289_v0, %v2129_v1  ;;  %v2334_v31 = vmax.f32 %v2298_v33, 0.0  ;;  %v4149_v4 = vld [vmem:[%s4548_s19 + $0x50] sm:$0xff]  ;;  %v4150_v1 = vld [vmem:[%s4548_s19 + $0x40] sm:$0xff] }
 0x34e   : > { %v3902_v54 = vpop.f32.mrf.mxu1 }
 0x34f   : > { %v2301_v44 = vadd.f32 %v3902_v54, %v2140_v40  ;;  %3943 = vmatprep.mubr.bf16.mxu0 %v2348_v51  ;;  %v2332_v12 = vmax.f32 %v2290_v34, 0.0 }
 0x350   : > { %v2292_v50 = vpop.f32.mrf.mxu1  ;;  %3944 = vmatmul.mubr.bf16.gmra.mxu0 %v2349_v59 }
 0x351   : > { %v2335_v41 = vmax.f32 %v2301_v44, 0.0  ;;  %v2293_v63 = vadd.f32 %v2292_v50, %v2132_v17 }
 0x353   : > { %v2351_v35 = vpack.c.bf16 %v2335_v41, %v2334_v31  ;;  %v2333_v48 = vmax.f32 %v2293_v63, 0.0  ;;  %v4152_v63 = vld [vmem:[%s4548_s19 + $0x48] sm:$0xff] }
 0x355   : > { %v2350_v15 = vpack.c.bf16 %v2333_v48, %v2332_v12 }
 0x357   : > { %3947 = vmatprep.mubr.bf16.mxu0 %v2350_v15 }
 0x358   : > { %3948 = vmatmul.mubr.bf16.gmra.mxu0 %v2351_v35 }
 0x3e0   : > { %v3921_v23 = vpop.f32.mrf.mxu0 }
 0x3e1   : > { %v2466_v10 = vadd.f32 %v3921_v23, %v5888_v58  ;;  %v4153_v23 = vld [vmem:[%s4548_s19 + $0x70] sm:$0xff] }
 0x3e2   : > { %v2457_v49 = vpop.f32.mrf.mxu0 }
 0x3e3   : > { %v2586_v16 = vadd.f32 %v4141_v8, %v2466_v10  ;;  %v2458_v32 = vadd.f32 %v5888_v58, %v2457_v49 }
 0x3e4   : > { %v3922_v22 = vpop.f32.mrf.mxu0 }
 0x3e5   : > { %v2618_v9 = vmax.f32 %v2586_v16, 0.0  ;;  %v2584_v19 = vadd.f32 %v4142_v3, %v2458_v32  ;;  %v2469_v30 = vadd.f32 %v3922_v22, %v5888_v58  ;;  %v4154_v32 = vld [vmem:[%s4548_s19 + $0x60] sm:$0xff] }
 0x3e6   : > { %v2460_v28 = vpop.f32.mrf.mxu0 }
 0x3e7   : > { %2650 = vst [vmem:[%s5897_s21 + $0x10] sm:$0xff] %v2618_v9  ;;  %v2616_v47 = vmax.f32 %v2584_v19, 0.0  ;;  %v2587_v60 = vadd.f32 %v4143_v18, %v2469_v30  ;;  %v2461_v57 = vadd.f32 %v5888_v58, %v2460_v28  ;;  %v4155_v30 = vld [vmem:[%s4548_s19 + $0x78] sm:$0xff] }
 0x3e8   : > { %v3925_v2 = vpop.f32.mrf.mxu0 }
 0x3e9   : > { %2648 = vst [vmem:[%s5897_s21] sm:$0xff] %v2616_v47  ;;  %v2619_v29 = vmax.f32 %v2587_v60, 0.0  ;;  %v2585_v38 = vadd.f32 %v4144_v36, %v2461_v57  ;;  %v2482_v39 = vadd.f32 %v3925_v2, %v5888_v58  ;;  %v4156_v57 = vld [vmem:[%s4548_s19 + $0x68] sm:$0xff] }
 0x3ea   : > { %v2473_v21 = vpop.f32.mrf.mxu0 }
 0x3eb   : > { %2651 = vst [vmem:[%s5897_s21 + $0x18] sm:$0xff] %v2619_v29  ;;  %v2617_v46 = vmax.f32 %v2585_v38, 0.0  ;;  %v2590_v25 = vadd.f32 %v4145_v56, %v2482_v39  ;;  %v2474_v7 = vadd.f32 %v5888_v58, %v2473_v21  ;;  %v4157_v39 = vld [vmem:[%s4548_s19 + $0x90] sm:$0xff] }
 0x3ec   : > { %v3926_v43 = vpop.f32.mrf.mxu0 }
 0x3ed   : > { %2649 = vst [vmem:[%s5897_s21 + $0x8] sm:$0xff] %v2617_v46  ;;  %v2622_v55 = vmax.f32 %v2590_v25, 0.0  ;;  %v2588_v5 = vadd.f32 %v4146_v11, %v2474_v7  ;;  %v2485_v61 = vadd.f32 %v3926_v43, %v5888_v58  ;;  %v4158_v7 = vld [vmem:[%s4548_s19 + $0x80] sm:$0xff] }
 0x3ee   : > { %v2476_v24 = vpop.f32.mrf.mxu0 }
 0x3ef   : > { %2654 = vst [vmem:[%s5897_s21 + $0x30] sm:$0xff] %v2622_v55  ;;  %v2620_v13 = vmax.f32 %v2588_v5, 0.0  ;;  %v2591_v14 = vadd.f32 %v4147_v26, %v2485_v61  ;;  %v2477_v6 = vadd.f32 %v5888_v58, %v2476_v24  ;;  %v4159_v61 = vld [vmem:[%s4548_s19 + $0x98] sm:$0xff] }
 0x3f0   : > { %v3929_v52 = vpop.f32.mrf.mxu0 }
 0x3f1   : > { %2652 = vst [vmem:[%s5897_s21 + $0x20] sm:$0xff] %v2620_v13  ;;  %v2623_v53 = vmax.f32 %v2591_v14, 0.0  ;;  %v2589_v37 = vadd.f32 %v4148_v20, %v2477_v6  ;;  %v2498_v42 = vadd.f32 %v3929_v52, %v5888_v58  ;;  %v4160_v6 = vld [vmem:[%s4548_s19 + $0x88] sm:$0xff] }
 0x3f2   : > { %v2489_v27 = vpop.f32.mrf.mxu0 }
 0x3f3   : > { %2655 = vst [vmem:[%s5897_s21 + $0x38] sm:$0xff] %v2623_v53  ;;  %v2621_v59 = vmax.f32 %v2589_v37, 0.0  ;;  %v2594_v45 = vadd.f32 %v4149_v4, %v2498_v42  ;;  %v2490_v0 = vadd.f32 %v5888_v58, %v2489_v27  ;;  %v4161_v42 = vld [vmem:[%s4548_s19 + $0xb0] sm:$0xff] }
 0x3f4   : > { %v3930_v51 = vpop.f32.mrf.mxu0 }
 0x3f5   : > { %2653 = vst [vmem:[%s5897_s21 + $0x28] sm:$0xff] %v2621_v59  ;;  %v2626_v33 = vmax.f32 %v2594_v45, 0.0  ;;  %v2592_v40 = vadd.f32 %v4150_v1, %v2490_v0  ;;  %v2501_v54 = vadd.f32 %v3930_v51, %v5888_v58  ;;  %v4162_v0 = vld [vmem:[%s4548_s19 + $0xa0] sm:$0xff] }
 0x3f6   : > { %v2492_v34 = vpop.f32.mrf.mxu0 }
 0x3f7   : > { %2658 = vst [vmem:[%s5897_s21 + $0x50] sm:$0xff] %v2626_v33  ;;  %v2624_v44 = vmax.f32 %v2592_v40, 0.0  ;;  %v2595_v17 = vadd.f32 %v4151_v62, %v2501_v54  ;;  %v2493_v50 = vadd.f32 %v5888_v58, %v2492_v34  ;;  %v4163_v54 = vld [vmem:[%s4548_s19 + $0xb8] sm:$0xff] }
 0x3f8   : > { %v3933_v31 = vpop.f32.mrf.mxu0 }
 0x3f9   : > { %2656 = vst [vmem:[%s5897_s21 + $0x40] sm:$0xff] %v2624_v44  ;;  %v2627_v41 = vmax.f32 %v2595_v17, 0.0  ;;  %v2593_v12 = vadd.f32 %v4152_v63, %v2493_v50  ;;  %v2514_v35 = vadd.f32 %v3933_v31, %v5888_v58  ;;  %v4164_v50 = vld [vmem:[%s4548_s19 + $0xa8] sm:$0xff] }
 0x3fa   : > { %v2505_v48 = vpop.f32.mrf.mxu0 }
 0x3fb   : > { %2659 = vst [vmem:[%s5897_s21 + $0x58] sm:$0xff] %v2627_v41  ;;  %v2625_v15 = vmax.f32 %v2593_v12, 0.0  ;;  %v2598_v10 = vadd.f32 %v4153_v23, %v2514_v35  ;;  %v2506_v49 = vadd.f32 %v5888_v58, %v2505_v48  ;;  %v4165_v35 = vld [vmem:[%s4548_s19 + $0xd0] sm:$0xff] }
 0x3fc   : > { %v3934_v8 = vpop.f32.mrf.mxu0 }
 0x3fd   : > { %2657 = vst [vmem:[%s5897_s21 + $0x48] sm:$0xff] %v2625_v15  ;;  %v2630_v16 = vmax.f32 %v2598_v10, 0.0  ;;  %v2596_v22 = vadd.f32 %v4154_v32, %v2506_v49  ;;  %v2517_v9 = vadd.f32 %v3934_v8, %v5888_v58  ;;  %v4166_v49 = vld [vmem:[%s4548_s19 + $0xc0] sm:$0xff] }
 0x3fe   : > { %v2508_v3 = vpop.f32.mrf.mxu0 }
 0x3ff   : > { %2662 = vst [vmem:[%s5897_s21 + $0x70] sm:$0xff] %v2630_v16  ;;  %v2628_v19 = vmax.f32 %v2596_v22, 0.0  ;;  %v2599_v28 = vadd.f32 %v4155_v30, %v2517_v9  ;;  %v2509_v47 = vadd.f32 %v5888_v58, %v2508_v3  ;;  %v4167_v9 = vld [vmem:[%s4548_s19 + $0xd8] sm:$0xff] }
 0x400   : > { %v3937_v18 = vpop.f32.mrf.mxu0 }
 0x401   : > { %2660 = vst [vmem:[%s5897_s21 + $0x60] sm:$0xff] %v2628_v19  ;;  %v2631_v60 = vmax.f32 %v2599_v28, 0.0  ;;  %v2597_v2 = vadd.f32 %v4156_v57, %v2509_v47  ;;  %v2530_v29 = vadd.f32 %v3937_v18, %v5888_v58  ;;  %v4168_v47 = vld [vmem:[%s4548_s19 + $0xc8] sm:$0xff] }
 0x402   : > { %v2521_v36 = vpop.f32.mrf.mxu0 }
 0x403   : > { %2663 = vst [vmem:[%s5897_s21 + $0x78] sm:$0xff] %v2631_v60  ;;  %v2629_v38 = vmax.f32 %v2597_v2, 0.0  ;;  %v2602_v21 = vadd.f32 %v4157_v39, %v2530_v29  ;;  %v2522_v46 = vadd.f32 %v5888_v58, %v2521_v36  ;;  %v4169_v29 = vld [vmem:[%s4548_s19 + $0xf0] sm:$0xff] }
 0x404   : > { %v3938_v56 = vpop.f32.mrf.mxu0 }
 0x405   : > { %2661 = vst [vmem:[%s5897_s21 + $0x68] sm:$0xff] %v2629_v38  ;;  %v2634_v25 = vmax.f32 %v2602_v21, 0.0  ;;  %v2600_v43 = vadd.f32 %v4158_v7, %v2522_v46  ;;  %v2533_v55 = vadd.f32 %v3938_v56, %v5888_v58  ;;  %v4170_v46 = vld [vmem:[%s4548_s19 + $0xe0] sm:$0xff] }
 0x406   : > { %v2524_v11 = vpop.f32.mrf.mxu0 }
 0x407   : > { %2666 = vst [vmem:[%s5897_s21 + $0x90] sm:$0xff] %v2634_v25  ;;  %v2632_v5 = vmax.f32 %v2600_v43, 0.0  ;;  %v2603_v24 = vadd.f32 %v4159_v61, %v2533_v55  ;;  %v2525_v13 = vadd.f32 %v5888_v58, %v2524_v11  ;;  %v4171_v55 = vld [vmem:[%s4548_s19 + $0xf8] sm:$0xff] }
 0x408   : > { %v3941_v26 = vpop.f32.mrf.mxu0 }
 0x409   : > { %2664 = vst [vmem:[%s5897_s21 + $0x80] sm:$0xff] %v2632_v5  ;;  %v2635_v14 = vmax.f32 %v2603_v24, 0.0  ;;  %v2601_v52 = vadd.f32 %v4160_v6, %v2525_v13  ;;  %v2546_v53 = vadd.f32 %v3941_v26, %v5888_v58  ;;  %v4172_v24 = vld [vmem:[%s4548_s19 + $0xe8] sm:$0xff]  ;;  %s4364_s19 = smov [#allocation10]  }
 0x40a   : > { %v2537_v20 = vpop.f32.mrf.mxu0  ;;  %s4283_s30 = sshll.u32 %s4364_s19, 4  ;;  %s4284_s30 = int_to_ptr.vmem [resolvable:$false] %s4283_s30 }
 0x40b   : > { %2667 = vst [vmem:[%s5897_s21 + $0x98] sm:$0xff] %v2635_v14  ;;  %v2633_v37 = vmax.f32 %v2601_v52, 0.0  ;;  %v2606_v27 = vadd.f32 %v4161_v42, %v2546_v53  ;;  %v2538_v59 = vadd.f32 %v5888_v58, %v2537_v20  ;;  %s4285_s9 = scalar_lea.vmem %s4284_s30, 8192  ;;  %p4286_p5 = scmp.lt.s32.totalorder %s5995_s12, %s4284_s30 }
 0x40c   : > { %v3942_v4 = vpop.f32.mrf.mxu0  ;;  %p4287_p3 = scmp.lt.s32.totalorder %s4285_s9, %s4279_s28 }
 0x40d   : > { %2665 = vst [vmem:[%s5897_s21 + $0x88] sm:$0xff] %v2633_v37  ;;  %v2638_v45 = vmax.f32 %v2606_v27, 0.0  ;;  %v2604_v51 = vadd.f32 %v4162_v0, %v2538_v59  ;;  %v2549_v33 = vadd.f32 %v3942_v4, %v5888_v58 }
 0x40e   : > { %v2540_v1 = vpop.f32.mrf.mxu0  ;;  %p4288_p7 = por %p4287_p3, %p4286_p5 }
 0x40f   : > { %2670 = vst [vmem:[%s5897_s21 + $0xb0] sm:$0xff] %v2638_v45  ;;  %v2636_v40 = vmax.f32 %v2604_v51, 0.0  ;;  %v2607_v34 = vadd.f32 %v4163_v54, %v2549_v33  ;;  %v2541_v44 = vadd.f32 %v5888_v58, %v2540_v1 }
 0x410   : > { %v3945_v62 = vpop.f32.mrf.mxu0  ;;  %p4289_p9 = pnand %p4288_p7, %p4282_p0 }
 0x411   : > { %2668 = vst [vmem:[%s5897_s21 + $0xa0] sm:$0xff] %v2636_v40  ;;  %v2639_v17 = vmax.f32 %v2607_v34, 0.0  ;;  %v2605_v31 = vadd.f32 %v4164_v50, %v2541_v44  ;;  %v2562_v41 = vadd.f32 %v3945_v62, %v5888_v58 }
 0x412   : > { %v2553_v63 = vpop.f32.mrf.mxu0 }
 0x413   : > { %2671 = vst [vmem:[%s5897_s21 + $0xb8] sm:$0xff] %v2639_v17  ;;  %v2637_v12 = vmax.f32 %v2605_v31, 0.0  ;;  %v2610_v48 = vadd.f32 %v4165_v35, %v2562_v41  ;;  %v2554_v15 = vadd.f32 %v5888_v58, %v2553_v63 }
 0x414   : > { %v3946_v23 = vpop.f32.mrf.mxu0 }
 0x415   : > { %2669 = vst [vmem:[%s5897_s21 + $0xa8] sm:$0xff] %v2637_v12  ;;  %v2642_v10 = vmax.f32 %v2610_v48, 0.0  ;;  %v2608_v8 = vadd.f32 %v4166_v49, %v2554_v15  ;;  %v2565_v16 = vadd.f32 %v3946_v23, %v5888_v58 }
 0x416   : > { %v2556_v32 = vpop.f32.mrf.mxu0 }
 0x417   : > { %2674 = vst [vmem:[%s5897_s21 + $0xd0] sm:$0xff] %v2642_v10  ;;  %v2640_v22 = vmax.f32 %v2608_v8, 0.0  ;;  %v2611_v3 = vadd.f32 %v4167_v9, %v2565_v16  ;;  %v2557_v19 = vadd.f32 %v5888_v58, %v2556_v32 }
 0x418   : > { %v3949_v30 = vpop.f32.mrf.mxu0 }
 0x419   : > { %2672 = vst [vmem:[%s5897_s21 + $0xc0] sm:$0xff] %v2640_v22  ;;  %v2643_v28 = vmax.f32 %v2611_v3, 0.0  ;;  %v2609_v18 = vadd.f32 %v4168_v47, %v2557_v19  ;;  %v2578_v60 = vadd.f32 %v3949_v30, %v5888_v58 }
 0x41a   : > { %v2569_v57 = vpop.f32.mrf.mxu0 }
 0x41b   : > { %2675 = vst [vmem:[%s5897_s21 + $0xd8] sm:$0xff] %v2643_v28  ;;  %v2641_v2 = vmax.f32 %v2609_v18, 0.0  ;;  %v2614_v36 = vadd.f32 %v4169_v29, %v2578_v60  ;;  %v2570_v38 = vadd.f32 %v5888_v58, %v2569_v57 }
 0x41c   : > { %v3950_v39 = vpop.f32.mrf.mxu0 }
 0x41d   : > { %2673 = vst [vmem:[%s5897_s21 + $0xc8] sm:$0xff] %v2641_v2  ;;  %v2646_v21 = vmax.f32 %v2614_v36, 0.0  ;;  %v2612_v56 = vadd.f32 %v4170_v46, %v2570_v38  ;;  %v2581_v25 = vadd.f32 %v3950_v39, %v5888_v58 }
 0x41e   : > { %v2572_v7 = vpop.f32.mrf.mxu0 }
 0x41f   : > { %2678 = vst [vmem:[%s5897_s21 + $0xf0] sm:$0xff] %v2646_v21  ;;  %v2644_v43 = vmax.f32 %v2612_v56, 0.0  ;;  %v2615_v11 = vadd.f32 %v4171_v55, %v2581_v25  ;;  %v2573_v5 = vadd.f32 %v5888_v58, %v2572_v7 }
 0x421   : > { %2676 = vst [vmem:[%s5897_s21 + $0xe0] sm:$0xff] %v2644_v43  ;;  %v2647_v61 = vmax.f32 %v2615_v11, 0.0  ;;  %v2613_v13 = vadd.f32 %v4172_v24, %v2573_v5 }
 0x423   : > { %2679 = vst [vmem:[%s5897_s21 + $0xf8] sm:$0xff] %v2647_v61  ;;  %v2645_v26 = vmax.f32 %v2613_v13, 0.0 }
 0x425   : > { %2677 = vst [vmem:[%s5897_s21 + $0xe8] sm:$0xff] %v2645_v26 }
 0x426   : > { %4292 = shalt.err (!%p4289_p9)
}
 0x427   : > { %s4293_s23 = scalar_lea.hbm %s5993_s1, 4096  ;;  %s4297_s13 = scalar_lea.hbm %s6047_s7, 8192 }
 0x428   : > { %p4294_p1 = scmp.ne.s32.totalorder %s5993_s1, %s4293_s23  ;;  %p4298_p11 = scmp.lt.s32.totalorder %s5993_s1, %s6047_s7 }
 0x429   : > { %p4299_p13 = scmp.lt.s32.totalorder %s4297_s13, %s4293_s23 }
 0x42a   : > { %p4295_p8 = pnand %p4294_p1, %p6209_p6 }
 0x42b   : > { %p4300_p2 = por %p4299_p13, %p4298_p11 }
 0x42c   : > { %p4296_p10 = pneg %p4295_p8 }
 0x42e   : > { %p4301_p4 = pnand %p4300_p2, %p4296_p10 }
 0x430   : > { %4304 = shalt.err (!%p4301_p4)
}
 0x431   : > { %s4365_s15 = smov 128   ;;  %s4366_s22 = smov 8  }
 0x432   : > { %3981 = dma.vmem_to_hbm [thread:$0]  (%p6209_p6), %s5995_s12, 4096, %s5993_s1, %s2681_s18, %s4365_s15, %s4365_s15, %s4366_s22  }
 0x433 PF: > { %s2709_s28 = sand.u32 1, %s4339_s24   ;;  %p6210_p12 = scmp.ne.s32.totalorder %s6083_s8, 0 }
 0x434   : > { %p6211_p0 = scmp.ge.s32.totalorder %s4351_s27, 2  ;;  %s2710_s19 = scalar_lea.sflag [#allocation4], %s2709_s28 }
 0x436   : > { %p3998_p5 = pnand %p6211_p0, %p6210_p12 }
 0x438   : > { %p3999_p3 = pneg %p3998_p5 }
 0x43a   : > { %4334 = dma.done.wait (%p3999_p3), %s2710_s19, 4096  }
 0x43b   : > { %4336 = vsyncadd (%p3999_p3), %s2710_s19, 4294963200  ;;  %p22_p7 = scmp.ge.s32.totalorder %s4487_s14, 4   ;;  %s6212_s24 = smov %s4343_s25 }
 0x43c   : > { %s6213_s25 = smov %s4347_s26  ;;  %s6214_s26 = smov %s4497_s17 }
 0x43d   : > { %s6215_s27 = smov %s4487_s14  ;;  %24 = sbr.rel (!%p22_p7) target bundleno = 9 (0x9), region = 105 }
 0x442   :  { %2715 = vsyncpa [#allocation3], 1 }
 0x443   :  { %2717 = vsyncpa [#allocation3 + $0x1], 1 }
 0x444   :  { %2718 = vsyncpa [#allocation6], 1 }
 0x445   :  { %2719 = vsyncpa [#allocation9], 1 }
 0x446   :  { %2720 = vsyncpa [#allocation4], 1 }
 0x447   :  { %2722 = vsyncpa [#allocation4 + $0x1], 1 }

</bundles_post_ra>
